<compile_context>
chip_gen: v7x
topology: tpu7x:2x2x1
jax: 0.10.0
libtpu: 0.0.40
codegen_flags: <defaults>
</compile_context>

<pallas_src>
import math
from functools import partial

import numpy as np
import jax
import jax.numpy as jnp
from jax import lax
from jax.experimental import pallas as pl
from jax.experimental.pallas import tpu as pltpu


# ----------------------------------------------------------------------------
# Pallas kernel: forward for a block of Bt images.
# All activations live as (rows = Bt*H, lanes = channels*W) matrices.
# ----------------------------------------------------------------------------
def lmasked_conv2d_kernel(
    vp_ref,      # (Bt, H+m, C*Wp)   top/side padded vertical stack (channel-major lanes)
    hp_ref,      # (Bt, H,   C*Whp)  left padded horizontal stack
    cond_ref,    # (Bt, H,   Cc*W)   conditional "image"
    wv_ref,      # (m, C*Wp, 2*C*W)  banded vertical conv weights (bf16)
    wh_ref,      # (C*Whp, 2*C*W)    banded horizontal conv weights (bf16)
    th_ref,      # (2*C*W, 2*C*W)    grouped 1x1 tohori as block-banded matrix
    cbw_ref,     # (Cc*W, 4*C*W)     fused conditional-bias weights [vvf|vvg|vhf|vhg]
    cbb_ref,     # (1, 4*C*W)        fused conditional biases
    tr_ref,      # (C*W, C*W)        grouped 1x1 tores as block-banded matrix
    sel_ref,     # (C*Whp, C*W)      0/1 matrix extracting the unpadded hxin
    vx_out_ref,  # (Bt, H, C*W)
    hx_out_ref,  # (Bt, H, C*W)
    *, H, m):
  Bt, Hp, CWp = vp_ref.shape
  _, _, CWhp = hp_ref.shape
  _, _, CcW = cond_ref.shape
  CW = vx_out_ref.shape[-1]
  rows = Bt * H

  hpf = hp_ref[...].reshape(rows, CWhp)      # f32, also used for the residual
  cond = cond_ref[...].reshape(rows, CcW)
  vp = vp_ref[...]

  # ---- vertical masked k x k conv: m row-shifted banded GEMMs --------------
  # (vmask zeroes rows >= m, so only the m top kernel rows contribute; the
  #  whole width/kw loop is folded into the band matrix -> K = C*Wp = 168.)
  acc_v = jnp.zeros((rows, 2 * CW), jnp.float32)
  for kh in range(m):
    slab = vp[:, kh:kh + H, :].reshape(rows, CWp).astype(jnp.bfloat16)
    acc_v = acc_v + jnp.dot(slab, wv_ref[kh],
                            preferred_element_type=jnp.float32)

  # ---- horizontal masked 1 x k conv: one banded GEMM -----------------------
  acc_h = jnp.dot(hpf.astype(jnp.bfloat16), wh_ref[...],
                  preferred_element_type=jnp.float32)

  # ---- hv connection: hx += tohori(vx)  (grouped 1x1 -> block-banded GEMM) -
  acc_h = acc_h + jnp.dot(acc_v, th_ref[...],
                          preferred_element_type=jnp.float32)

  # ---- fused conditional biases: one GEMM -> [vvf | vvg | vhf | vhg] -------
  cb = jnp.dot(cond, cbw_ref[...],
               preferred_element_type=jnp.float32) + cbb_ref[...]

  # ---- gated activations ---------------------------------------------------
  vx = jnp.tanh(acc_v[:, :CW] + cb[:, :CW]) * \
       jax.nn.sigmoid(acc_v[:, CW:] + cb[:, CW:2 * CW])
  hg = jnp.tanh(acc_h[:, :CW] + cb[:, 2 * CW:3 * CW]) * \
       jax.nn.sigmoid(acc_h[:, CW:] + cb[:, 3 * CW:])

  # ---- residual: hx = hxin + tores(hg) --------------------------------------
  # hxin is recovered from the padded horizontal stream via an exact 0/1
  # selection GEMM (avoids a third activation input stream).
  hx = jnp.dot(hpf, sel_ref[...], preferred_element_type=jnp.float32) + \
       jnp.dot(hg, tr_ref[...], preferred_element_type=jnp.float32)

  vx_out_ref[...] = vx.reshape(Bt, H, CW).astype(vx_out_ref.dtype)
  hx_out_ref[...] = hx.reshape(Bt, H, CW).astype(hx_out_ref.dtype)


# ----------------------------------------------------------------------------
# Wrapper: NCHW in / NCHW out.  Layout prep (pad / transpose / flatten) is
# plain XLA glue around the pallas_call.
# ----------------------------------------------------------------------------
def lmasked_conv2d_forward(vxin, hxin, h, params, *, k=7, padding=3,
                           batch_block=8):
  B, C, H, W = vxin.shape
  Cc = h.shape[1]
  p = padding
  m = k // 2
  assert p == m, "kernel assumes 'same' padding (padding == k // 2)"
  Wp = W + 2 * p          # width seen by the vertical conv
  Whp = W + p             # width seen by the horizontal conv (left pad only)
  Hp = H + m              # only the top m padded rows are ever read
  CW = C * W

  # --- layout prep: NCHW -> (B, image-row, channel-major lanes) -------------
  vp = jnp.pad(vxin, ((0, 0), (0, 0), (m, 0), (p, p)))
  vp = jnp.transpose(vp, (0, 2, 1, 3)).reshape(B, Hp, C * Wp)
  hp = jnp.pad(hxin, ((0, 0), (0, 0), (0, 0), (p, 0)))
  hp = jnp.transpose(hp, (0, 2, 1, 3)).reshape(B, H, C * Whp)
  cond = jnp.transpose(h, (0, 2, 1, 3)).reshape(B, H, Cc * W)

  # --- batch blocking: Bt images per grid step -------------------------------
  # Bt is sized against the smallest-VMEM generation (v7x: 64 MiB physical,
  # 32 MiB default scoped); at these lane widths even Bt=32 is only a few MiB.
  Bt = max(1, min(batch_block, B))
  Bp = ((B + Bt - 1) // Bt) * Bt
  if Bp != B:
    padn = Bp - B
    vp = jnp.pad(vp, ((0, padn), (0, 0), (0, 0)))
    hp = jnp.pad(hp, ((0, padn), (0, 0), (0, 0)))
    cond = jnp.pad(cond, ((0, padn), (0, 0), (0, 0)))

  def batch_spec(block_shape):
    n = len(block_shape) - 1
    return pl.BlockSpec(block_shape, lambda b, _n=n: (b,) + (0,) * _n)

  def const_spec(shape):
    n = len(shape)
    return pl.BlockSpec(tuple(shape), lambda b, _n=n: (0,) * _n)

  weight_keys = ('wv_band', 'wh_band', 'th_band', 'cb_w', 'cb_b',
                 'tr_band', 'sel')
  weights = [params[kk] for kk in weight_keys]

  in_specs = [
      batch_spec((Bt, Hp, C * Wp)),
      batch_spec((Bt, H, C * Whp)),
      batch_spec((Bt, H, Cc * W)),
  ] + [const_spec(w.shape) for w in weights]
  out_specs = [batch_spec((Bt, H, CW)), batch_spec((Bt, H, CW))]

  # Advisory cost estimate for XLA's scheduler.
  wbytes = sum(int(w.size) * w.dtype.itemsize for w in weights)
  flops = 2 * Bp * H * (m * (C * Wp) * (2 * CW) + (C * Whp) * (2 * CW)
                        + (2 * CW) * (2 * CW) + (Cc * W) * (4 * CW)
                        + CW * CW + (C * Whp) * CW)
  cost = pl.CostEstimate(
      flops=int(flops),
      transcendentals=int(Bp * H * 4 * CW),
      bytes_accessed=int(4 * (vp.size + hp.size + cond.size + 2 * Bp * H * CW)
                         + wbytes))

  kernel = partial(lmasked_conv2d_kernel, H=H, m=m)
  vx, hx = pl.pallas_call(
      kernel,
      out_shape=(jax.ShapeDtypeStruct((Bp, H, CW), jnp.float32),
                 jax.ShapeDtypeStruct((Bp, H, CW), jnp.float32)),
      grid_spec=pltpu.PrefetchScalarGridSpec(
          num_scalar_prefetch=0,
          grid=(Bp // Bt,),
          in_specs=in_specs,
          out_specs=out_specs),
      compiler_params=pltpu.CompilerParams(
          dimension_semantics=("parallel",),       # lets v7x split over 2 TCs
          vmem_limit_bytes=32 * 1024 * 1024),
      cost_estimate=cost,
  )(vp, hp, cond, *weights)

  vx = vx[:B].reshape(B, H, C, W).transpose(0, 2, 1, 3)
  hx = hx[:B].reshape(B, H, C, W).transpose(0, 2, 1, 3)
  return vx, hx


# ----------------------------------------------------------------------------
# Parameter construction (replicates LMaskedConv2d.__init__ shapes & masks).
# ----------------------------------------------------------------------------
def init_params(key, *, C, Cc, colors, k, self_connection=False):
  f = 2  # gates=True
  keys = jax.random.split(key, 12)

  def rnd(kk, shape, fan_in):
    return (jax.random.normal(kk, shape, jnp.float32) /
            np.float32(math.sqrt(fan_in)))

  wv = rnd(keys[0], (f * C, C, k, k), C * k * k)                  # OIHW
  wh = rnd(keys[1], (f * C, C, 1, k), C * k)
  wth = rnd(keys[2], (f * C, (f * C) // colors, 1, 1), (f * C) // colors)
  wtr = rnd(keys[3], (C, C // colors, 1, 1), C // colors)
  vhf_w = rnd(keys[4], (C, Cc, 1, 1), Cc); vhf_b = rnd(keys[5], (C,), 1.0)
  vhg_w = rnd(keys[6], (C, Cc, 1, 1), Cc); vhg_b = rnd(keys[7], (C,), 1.0)
  vvf_w = rnd(keys[8], (C, Cc, 1, 1), Cc); vvf_b = rnd(keys[9], (C,), 1.0)
  vvg_w = rnd(keys[10], (C, Cc, 1, 1), Cc); vvg_b = rnd(keys[11], (C,), 1.0)

  # masks exactly as in LMaskedConv2d.__init__
  m = k // 2
  pc = C // colors
  vmask = np.ones((f * C, C, k, k), np.float32)
  vmask[:, :, m:, :] = 0.0
  hmask = np.ones((f * C, C, 1, k), np.float32)
  hmask[:, :, :, m:] = 0.0
  for c in range(colors):
    fr, to = c * pc, (c + 1) * pc
    if fr > 0:
      hmask[fr:to, :fr, 0, m] = 1.0
      hmask[fr + C:to + C, :fr, 0, m] = 1.0
    if self_connection:
      hmask[fr:to, :fr + pc, 0, m] = 1.0
      hmask[fr + C:to + C, :fr + pc, 0, m] = 1.0
  # TODO(synk): the PyTorch __init__ prints hmask (host-side side effect); omitted.

  return dict(
      wv_masked=jnp.asarray(np.asarray(wv) * vmask),   # forward does weight *= mask
      wh_masked=jnp.asarray(np.asarray(wh) * hmask),
      wth=wth, wtr=wtr,
      vhf_w=vhf_w, vhf_b=vhf_b, vhg_w=vhg_w, vhg_b=vhg_b,
      vvf_w=vvf_w, vvf_b=vvf_b, vvg_w=vvg_w, vvg_b=vvg_b)


def grouped_to_matrix(wgt, groups):
  # PyTorch grouped 1x1 conv -> equivalent block-diagonal (in, out) matrix.
  w2 = np.asarray(wgt)[:, :, 0, 0]
  out_ch, ipg = w2.shape
  opg = out_ch // groups
  M = np.zeros((ipg * groups, out_ch), np.float32)
  for o in range(out_ch):
    g = o // opg
    M[g * ipg:(g + 1) * ipg, o] = w2[o]
  return M


def build_kernel_params(raw, *, C, Cc, colors, k, padding, W):
  """Host-side construction of the banded weight matrices used by the kernel."""
  p = padding
  m = k // 2
  assert p == m
  f = 2
  Wp = W + 2 * p
  Whp = W + p
  CW = C * W

  wv = np.asarray(raw['wv_masked'])   # (2C, C, k, k)
  wh = np.asarray(raw['wh_masked'])   # (2C, C, 1, k)

  ci = np.arange(C)
  co2 = np.arange(f * C)
  co1 = np.arange(C)

  # Vertical conv: for each of the m unmasked kernel rows, a band matrix
  # mapping a (C*Wp)-wide padded image row to all W output positions x 2C ch.
  wv_band = np.zeros((m, C * Wp, f * CW), np.float32)
  for kh in range(m):
    for kw in range(k):
      for j in range(W):
        wv_band[kh, (ci * Wp + j + kw)[:, None],
                (co2 * W + j)[None, :]] = wv[:, :, kh, kw].T

  # Horizontal conv: only taps kw <= m survive the mask (incl. the partially
  # re-enabled causal column m).
  wh_band = np.zeros((C * Whp, f * CW), np.float32)
  for kw in range(m + 1):
    for j in range(W):
      wh_band[(ci * Whp + j + kw)[:, None],
              (co2 * W + j)[None, :]] = wh[:, :, 0, kw].T

  M_th = grouped_to_matrix(raw['wth'], colors)     # (2C, 2C) in -> out
  th_band = np.zeros((f * CW, f * CW), np.float32)
  for j in range(W):
    th_band[(co2 * W + j)[:, None], (co2 * W + j)[None, :]] = M_th

  M_tr = grouped_to_matrix(raw['wtr'], colors)     # (C, C)
  tr_band = np.zeros((CW, CW), np.float32)
  for j in range(W):
    tr_band[(co1 * W + j)[:, None], (co1 * W + j)[None, :]] = M_tr

  # Fused conditional-bias 1x1 convs: [vvf | vvg | vhf | vhg].
  cc = np.arange(Cc)
  cb_w = np.zeros((Cc * W, 4 * CW), np.float32)
  cb_b = np.zeros((1, 4 * CW), np.float32)
  packs = [('vvf_w', 'vvf_b'), ('vvg_w', 'vvg_b'),
           ('vhf_w', 'vhf_b'), ('vhg_w', 'vhg_b')]
  for t, (wk, bk) in enumerate(packs):
    w2 = np.asarray(raw[wk])[:, :, 0, 0]           # (C, Cc)
    b1 = np.asarray(raw[bk])                       # (C,)
    for j in range(W):
      cb_w[(cc * W + j)[:, None],
           t * CW + (co1 * W + j)[None, :]] = w2.T
    cb_b[0, t * CW:(t + 1) * CW] = np.repeat(b1, W)

  # 0/1 selection matrix pulling the unpadded hxin out of the padded stream.
  sel = np.zeros((C * Whp, CW), np.float32)
  for j in range(W):
    sel[ci * Whp + p + j, ci * W + j] = 1.0

  return dict(
      wv_band=jnp.asarray(wv_band, jnp.bfloat16),   # bf16 MXU inputs
      wh_band=jnp.asarray(wh_band, jnp.bfloat16),
      th_band=jnp.asarray(th_band),
      cb_w=jnp.asarray(cb_w), cb_b=jnp.asarray(cb_b),
      tr_band=jnp.asarray(tr_band),
      sel=jnp.asarray(sel))


# ----------------------------------------------------------------------------
# Pure-JAX reference (mirrors the PyTorch forward, NCHW) for verification.
# ----------------------------------------------------------------------------
def reference_forward(vxin, hxin, h, raw, *, padding=3, colors=3):
  dn = ('NCHW', 'OIHW', 'NCHW')
  p = padding
  hi = lax.Precision.HIGHEST

  def conv(x, w, pad, groups=1):
    return lax.conv_general_dilated(x, w, (1, 1), pad, dimension_numbers=dn,
                                    feature_group_count=groups, precision=hi)

  vx = conv(vxin, raw['wv_masked'], ((p, p), (p, p)))
  hx = conv(hxin, raw['wh_masked'], ((0, 0), (p, p)))
  hx = hx + conv(vx, raw['wth'], ((0, 0), (0, 0)), groups=colors)

  def conv1x1(x, w, b):
    return conv(x, w, ((0, 0), (0, 0))) + b[None, :, None, None]

  def gate(x, wf, bf, wg, bg):
    half = x.shape[1] // 2
    tb = conv1x1(h, wf, bf)
    sb = conv1x1(h, wg, bg)
    return jnp.tanh(x[:, :half] + tb) * jax.nn.sigmoid(x[:, half:] + sb)

  vx = gate(vx, raw['vvf_w'], raw['vvf_b'], raw['vvg_w'], raw['vvg_b'])
  hx = gate(hx, raw['vhf_w'], raw['vhf_b'], raw['vhg_w'], raw['vhg_b'])
  hx = hxin + conv(hx, raw['wtr'], ((0, 0), (0, 0)), groups=colors)
  return vx, hx


if __name__ == "__main__":
  B, colors, C, Cc, H, W = 8, 3, 12, 4, 8, 8
  k, padding = 7, 3

  key = jax.random.PRNGKey(0)
  k1, k2, k3, kp = jax.random.split(key, 4)
  vxin = jax.random.normal(k1, (B, C, H, W), jnp.float32)
  hxin = jax.random.normal(k2, (B, C, H, W), jnp.float32)
  h = jax.random.normal(k3, (B, Cc, H, W), jnp.float32)

  raw = init_params(kp, C=C, Cc=Cc, colors=colors, k=k)
  kparams = build_kernel_params(raw, C=C, Cc=Cc, colors=colors, k=k,
                                padding=padding, W=W)

  vx, hx = lmasked_conv2d_forward(vxin, hxin, h, kparams,
                                  k=k, padding=padding, batch_block=4)
  jax.block_until_ready((vx, hx))

  vx_ref, hx_ref = reference_forward(vxin, hxin, h, raw,
                                     padding=padding, colors=colors)
  np.testing.assert_allclose(np.asarray(vx), np.asarray(vx_ref),
                             rtol=1e-2, atol=1e-2)
  np.testing.assert_allclose(np.asarray(hx), np.asarray(hx_ref),
                             rtol=1e-2, atol=1e-2)
  print("KERNEL_OK")
</pallas_src>

<mosaic_0001>
module attributes {stable_mosaic.version = 11 : i64} {
  func.func @lmasked_conv2d_kernel(%arg0: i32, %arg1: memref<4x11x168xf32, #tpu.memory_space<vmem>>, %arg2: memref<4x8x132xf32, #tpu.memory_space<vmem>>, %arg3: memref<4x8x32xf32, #tpu.memory_space<vmem>>, %arg4: memref<3x168x192xbf16, #tpu.memory_space<vmem>>, %arg5: memref<132x192xbf16, #tpu.memory_space<vmem>>, %arg6: memref<192x192xf32, #tpu.memory_space<vmem>>, %arg7: memref<32x384xf32, #tpu.memory_space<vmem>>, %arg8: memref<1x384xf32, #tpu.memory_space<vmem>>, %arg9: memref<96x96xf32, #tpu.memory_space<vmem>>, %arg10: memref<132x96xf32, #tpu.memory_space<vmem>>, %arg11: memref<4x8x96xf32, #tpu.memory_space<vmem>>, %arg12: memref<4x8x96xf32, #tpu.memory_space<vmem>>) attributes {dimension_semantics = [#tpu.dimension_semantics<parallel>], iteration_bounds = array<i64: 2>, scalar_prefetch = 0 : i64, scratch_operands = 0 : i64, tpu.core_type = #tpu.core_type<tc>, window_params = [{transform_indices = @transform_0, window_bounds = array<i64: 4, 11, 168>}, {transform_indices = @transform_1, window_bounds = array<i64: 4, 8, 132>}, {transform_indices = @transform_2, window_bounds = array<i64: 4, 8, 32>}, {pipeline_mode = #tpu.pipeline_mode<synchronous>, transform_indices = @transform_3, window_bounds = array<i64: 3, 168, 192>}, {pipeline_mode = #tpu.pipeline_mode<synchronous>, transform_indices = @transform_4, window_bounds = array<i64: 132, 192>}, {pipeline_mode = #tpu.pipeline_mode<synchronous>, transform_indices = @transform_5, window_bounds = array<i64: 192, 192>}, {pipeline_mode = #tpu.pipeline_mode<synchronous>, transform_indices = @transform_6, window_bounds = array<i64: 32, 384>}, {pipeline_mode = #tpu.pipeline_mode<synchronous>, transform_indices = @transform_7, window_bounds = array<i64: 1, 384>}, {pipeline_mode = #tpu.pipeline_mode<synchronous>, transform_indices = @transform_8, window_bounds = array<i64: 96, 96>}, {pipeline_mode = #tpu.pipeline_mode<synchronous>, transform_indices = @transform_9, window_bounds = array<i64: 132, 96>}, {transform_indices = @transform_10, window_bounds = array<i64: 4, 8, 96>}, {transform_indices = @transform_11, window_bounds = array<i64: 4, 8, 96>}]} {
    %c0 = arith.constant 0 : index
    %c0_0 = arith.constant 0 : index
    %c0_1 = arith.constant 0 : index
    %0 = vector.load %arg2[%c0, %c0_0, %c0_1] : memref<4x8x132xf32, #tpu.memory_space<vmem>>, vector<4x8x132xf32>
    %1 = vector.shape_cast %0 : vector<4x8x132xf32> to vector<32x132xf32>
    %c0_2 = arith.constant 0 : index
    %c0_3 = arith.constant 0 : index
    %c0_4 = arith.constant 0 : index
    %2 = vector.load %arg3[%c0_2, %c0_3, %c0_4] : memref<4x8x32xf32, #tpu.memory_space<vmem>>, vector<4x8x32xf32>
    %3 = vector.shape_cast %2 : vector<4x8x32xf32> to vector<32x32xf32>
    %c0_5 = arith.constant 0 : index
    %c0_6 = arith.constant 0 : index
    %c0_7 = arith.constant 0 : index
    %4 = vector.load %arg1[%c0_5, %c0_6, %c0_7] : memref<4x11x168xf32, #tpu.memory_space<vmem>>, vector<4x11x168xf32>
    %cst = arith.constant 0.000000e+00 : f32
    %5 = vector.broadcast %cst : f32 to vector<32x192xf32>
    %6 = vector.extract_strided_slice %4 {offsets = [0, 0, 0], sizes = [4, 8, 168], strides = [1, 1, 1]} : vector<4x11x168xf32> to vector<4x8x168xf32>
    %7 = vector.shape_cast %6 : vector<4x8x168xf32> to vector<32x168xf32>
    %8 = arith.truncf %7 : vector<32x168xf32> to vector<32x168xbf16>
    %c0_8 = arith.constant 0 : index
    %c0_9 = arith.constant 0 : index
    %c0_10 = arith.constant 0 : index
    %9 = vector.load %arg4[%c0_8, %c0_9, %c0_10] : memref<3x168x192xbf16, #tpu.memory_space<vmem>>, vector<1x168x192xbf16>
    %10 = vector.shape_cast %9 : vector<1x168x192xbf16> to vector<168x192xbf16>
    %cst_11 = arith.constant dense<0.000000e+00> : vector<32x192xf32>
    %11 = tpu.matmul %8, %10, %cst_11 {dimension_numbers = #tpu.dot_dimension_numbers<[1], [0], [0], [1], [0, 0, 1, 1], [], []>} : vector<32x168xbf16>, vector<168x192xbf16>, vector<32x192xf32> -> vector<32x192xf32>
    %12 = arith.addf %5, %11 : vector<32x192xf32>
    %13 = vector.extract_strided_slice %4 {offsets = [0, 1, 0], sizes = [4, 8, 168], strides = [1, 1, 1]} : vector<4x11x168xf32> to vector<4x8x168xf32>
    %14 = vector.shape_cast %13 : vector<4x8x168xf32> to vector<32x168xf32>
    %15 = arith.truncf %14 : vector<32x168xf32> to vector<32x168xbf16>
    %c1 = arith.constant 1 : index
    %c0_12 = arith.constant 0 : index
    %c0_13 = arith.constant 0 : index
    %16 = vector.load %arg4[%c1, %c0_12, %c0_13] : memref<3x168x192xbf16, #tpu.memory_space<vmem>>, vector<1x168x192xbf16>
    %17 = vector.shape_cast %16 : vector<1x168x192xbf16> to vector<168x192xbf16>
    %cst_14 = arith.constant dense<0.000000e+00> : vector<32x192xf32>
    %18 = tpu.matmul %15, %17, %cst_14 {dimension_numbers = #tpu.dot_dimension_numbers<[1], [0], [0], [1], [0, 0, 1, 1], [], []>} : vector<32x168xbf16>, vector<168x192xbf16>, vector<32x192xf32> -> vector<32x192xf32>
    %19 = arith.addf %12, %18 : vector<32x192xf32>
    %20 = vector.extract_strided_slice %4 {offsets = [0, 2, 0], sizes = [4, 8, 168], strides = [1, 1, 1]} : vector<4x11x168xf32> to vector<4x8x168xf32>
    %21 = vector.shape_cast %20 : vector<4x8x168xf32> to vector<32x168xf32>
    %22 = arith.truncf %21 : vector<32x168xf32> to vector<32x168xbf16>
    %c2 = arith.constant 2 : index
    %c0_15 = arith.constant 0 : index
    %c0_16 = arith.constant 0 : index
    %23 = vector.load %arg4[%c2, %c0_15, %c0_16] : memref<3x168x192xbf16, #tpu.memory_space<vmem>>, vector<1x168x192xbf16>
    %24 = vector.shape_cast %23 : vector<1x168x192xbf16> to vector<168x192xbf16>
    %cst_17 = arith.constant dense<0.000000e+00> : vector<32x192xf32>
    %25 = tpu.matmul %22, %24, %cst_17 {dimension_numbers = #tpu.dot_dimension_numbers<[1], [0], [0], [1], [0, 0, 1, 1], [], []>} : vector<32x168xbf16>, vector<168x192xbf16>, vector<32x192xf32> -> vector<32x192xf32>
    %26 = arith.addf %19, %25 : vector<32x192xf32>
    %27 = arith.truncf %1 : vector<32x132xf32> to vector<32x132xbf16>
    %c0_18 = arith.constant 0 : index
    %c0_19 = arith.constant 0 : index
    %28 = vector.load %arg5[%c0_18, %c0_19] : memref<132x192xbf16, #tpu.memory_space<vmem>>, vector<132x192xbf16>
    %cst_20 = arith.constant dense<0.000000e+00> : vector<32x192xf32>
    %29 = tpu.matmul %27, %28, %cst_20 {dimension_numbers = #tpu.dot_dimension_numbers<[1], [0], [0], [1], [0, 0, 1, 1], [], []>} : vector<32x132xbf16>, vector<132x192xbf16>, vector<32x192xf32> -> vector<32x192xf32>
    %c0_21 = arith.constant 0 : index
    %c0_22 = arith.constant 0 : index
    %30 = vector.load %arg6[%c0_21, %c0_22] : memref<192x192xf32, #tpu.memory_space<vmem>>, vector<192x192xf32>
    %cst_23 = arith.constant dense<0.000000e+00> : vector<32x192xf32>
    %31 = tpu.matmul %26, %30, %cst_23 {dimension_numbers = #tpu.dot_dimension_numbers<[1], [0], [0], [1], [0, 0, 1, 1], [], []>} : vector<32x192xf32>, vector<192x192xf32>, vector<32x192xf32> -> vector<32x192xf32>
    %32 = arith.addf %29, %31 : vector<32x192xf32>
    %c0_24 = arith.constant 0 : index
    %c0_25 = arith.constant 0 : index
    %33 = vector.load %arg7[%c0_24, %c0_25] : memref<32x384xf32, #tpu.memory_space<vmem>>, vector<32x384xf32>
    %cst_26 = arith.constant dense<0.000000e+00> : vector<32x384xf32>
    %34 = tpu.matmul %3, %33, %cst_26 {dimension_numbers = #tpu.dot_dimension_numbers<[1], [0], [0], [1], [0, 0, 1, 1], [], []>} : vector<32x32xf32>, vector<32x384xf32>, vector<32x384xf32> -> vector<32x384xf32>
    %c0_27 = arith.constant 0 : index
    %c0_28 = arith.constant 0 : index
    %35 = vector.load %arg8[%c0_27, %c0_28] : memref<1x384xf32, #tpu.memory_space<vmem>>, vector<1x384xf32>
    %36 = vector.broadcast %35 : vector<1x384xf32> to vector<32x384xf32>
    %37 = arith.addf %34, %36 : vector<32x384xf32>
    %38 = vector.extract_strided_slice %26 {offsets = [0, 0], sizes = [32, 96], strides = [1, 1]} : vector<32x192xf32> to vector<32x96xf32>
    %39 = vector.extract_strided_slice %37 {offsets = [0, 0], sizes = [32, 96], strides = [1, 1]} : vector<32x384xf32> to vector<32x96xf32>
    %40 = arith.addf %38, %39 : vector<32x96xf32>
    %41 = math.tanh %40 : vector<32x96xf32>
    %42 = vector.extract_strided_slice %26 {offsets = [0, 96], sizes = [32, 96], strides = [1, 1]} : vector<32x192xf32> to vector<32x96xf32>
    %43 = vector.extract_strided_slice %37 {offsets = [0, 96], sizes = [32, 96], strides = [1, 1]} : vector<32x384xf32> to vector<32x96xf32>
    %44 = arith.addf %42, %43 : vector<32x96xf32>
    %45 = arith.negf %44 : vector<32x96xf32>
    %46 = math.exp %45 : vector<32x96xf32>
    %cst_29 = arith.constant 1.000000e+00 : f32
    %47 = vector.broadcast %cst_29 : f32 to vector<32x96xf32>
    %48 = arith.addf %47, %46 : vector<32x96xf32>
    %49 = arith.divf %47, %48 : vector<32x96xf32>
    %50 = arith.mulf %41, %49 : vector<32x96xf32>
    %51 = vector.extract_strided_slice %32 {offsets = [0, 0], sizes = [32, 96], strides = [1, 1]} : vector<32x192xf32> to vector<32x96xf32>
    %52 = vector.extract_strided_slice %37 {offsets = [0, 192], sizes = [32, 96], strides = [1, 1]} : vector<32x384xf32> to vector<32x96xf32>
    %53 = arith.addf %51, %52 : vector<32x96xf32>
    %54 = math.tanh %53 : vector<32x96xf32>
    %55 = vector.extract_strided_slice %32 {offsets = [0, 96], sizes = [32, 96], strides = [1, 1]} : vector<32x192xf32> to vector<32x96xf32>
    %56 = vector.extract_strided_slice %37 {offsets = [0, 288], sizes = [32, 96], strides = [1, 1]} : vector<32x384xf32> to vector<32x96xf32>
    %57 = arith.addf %55, %56 : vector<32x96xf32>
    %58 = arith.negf %57 : vector<32x96xf32>
    %59 = math.exp %58 : vector<32x96xf32>
    %cst_30 = arith.constant 1.000000e+00 : f32
    %60 = vector.broadcast %cst_30 : f32 to vector<32x96xf32>
    %61 = arith.addf %60, %59 : vector<32x96xf32>
    %62 = arith.divf %60, %61 : vector<32x96xf32>
    %63 = arith.mulf %54, %62 : vector<32x96xf32>
    %c0_31 = arith.constant 0 : index
    %c0_32 = arith.constant 0 : index
    %64 = vector.load %arg10[%c0_31, %c0_32] : memref<132x96xf32, #tpu.memory_space<vmem>>, vector<132x96xf32>
    %cst_33 = arith.constant dense<0.000000e+00> : vector<32x96xf32>
    %65 = tpu.matmul %1, %64, %cst_33 {dimension_numbers = #tpu.dot_dimension_numbers<[1], [0], [0], [1], [0, 0, 1, 1], [], []>} : vector<32x132xf32>, vector<132x96xf32>, vector<32x96xf32> -> vector<32x96xf32>
    %c0_34 = arith.constant 0 : index
    %c0_35 = arith.constant 0 : index
    %66 = vector.load %arg9[%c0_34, %c0_35] : memref<96x96xf32, #tpu.memory_space<vmem>>, vector<96x96xf32>
    %cst_36 = arith.constant dense<0.000000e+00> : vector<32x96xf32>
    %67 = tpu.matmul %63, %66, %cst_36 {dimension_numbers = #tpu.dot_dimension_numbers<[1], [0], [0], [1], [0, 0, 1, 1], [], []>} : vector<32x96xf32>, vector<96x96xf32>, vector<32x96xf32> -> vector<32x96xf32>
    %68 = arith.addf %65, %67 : vector<32x96xf32>
    %69 = vector.shape_cast %50 : vector<32x96xf32> to vector<4x8x96xf32>
    %c0_37 = arith.constant 0 : index
    %c0_38 = arith.constant 0 : index
    %c0_39 = arith.constant 0 : index
    %70 = vector.load %arg11[%c0_37, %c0_38, %c0_39] : memref<4x8x96xf32, #tpu.memory_space<vmem>>, vector<4x8x96xf32>
    tpu.vector_store %arg11[%c0_37, %c0_38, %c0_39], %69 {strides = array<i32>} : memref<4x8x96xf32, #tpu.memory_space<vmem>>, vector<4x8x96xf32>,
    %71 = vector.shape_cast %68 : vector<32x96xf32> to vector<4x8x96xf32>
    %c0_40 = arith.constant 0 : index
    %c0_41 = arith.constant 0 : index
    %c0_42 = arith.constant 0 : index
    %72 = vector.load %arg12[%c0_40, %c0_41, %c0_42] : memref<4x8x96xf32, #tpu.memory_space<vmem>>, vector<4x8x96xf32>
    tpu.vector_store %arg12[%c0_40, %c0_41, %c0_42], %71 {strides = array<i32>} : memref<4x8x96xf32, #tpu.memory_space<vmem>>, vector<4x8x96xf32>,
    return
  }
  func.func @transform_0(%arg0: i32) -> (i32, i32, i32) {
    %c0_i32 = arith.constant 0 : i32
    %c0_i32_0 = arith.constant 0 : i32
    %c0_i32_1 = arith.constant 0 : i32
    return %arg0, %c0_i32, %c0_i32_0 : i32, i32, i32
  }
  func.func @transform_1(%arg0: i32) -> (i32, i32, i32) {
    %c0_i32 = arith.constant 0 : i32
    %c0_i32_0 = arith.constant 0 : i32
    %c0_i32_1 = arith.constant 0 : i32
    return %arg0, %c0_i32, %c0_i32_0 : i32, i32, i32
  }
  func.func @transform_2(%arg0: i32) -> (i32, i32, i32) {
    %c0_i32 = arith.constant 0 : i32
    %c0_i32_0 = arith.constant 0 : i32
    %c0_i32_1 = arith.constant 0 : i32
    return %arg0, %c0_i32, %c0_i32_0 : i32, i32, i32
  }
  func.func @transform_3(%arg0: i32) -> (i32, i32, i32) {
    %c0_i32 = arith.constant 0 : i32
    %c0_i32_0 = arith.constant 0 : i32
    %c0_i32_1 = arith.constant 0 : i32
    %c0_i32_2 = arith.constant 0 : i32
    return %c0_i32, %c0_i32_0, %c0_i32_1 : i32, i32, i32
  }
  func.func @transform_4(%arg0: i32) -> (i32, i32) {
    %c0_i32 = arith.constant 0 : i32
    %c0_i32_0 = arith.constant 0 : i32
    %c0_i32_1 = arith.constant 0 : i32
    return %c0_i32, %c0_i32_0 : i32, i32
  }
  func.func @transform_5(%arg0: i32) -> (i32, i32) {
    %c0_i32 = arith.constant 0 : i32
    %c0_i32_0 = arith.constant 0 : i32
    %c0_i32_1 = arith.constant 0 : i32
    return %c0_i32, %c0_i32_0 : i32, i32
  }
  func.func @transform_6(%arg0: i32) -> (i32, i32) {
    %c0_i32 = arith.constant 0 : i32
    %c0_i32_0 = arith.constant 0 : i32
    %c0_i32_1 = arith.constant 0 : i32
    return %c0_i32, %c0_i32_0 : i32, i32
  }
  func.func @transform_7(%arg0: i32) -> (i32, i32) {
    %c0_i32 = arith.constant 0 : i32
    %c0_i32_0 = arith.constant 0 : i32
    %c0_i32_1 = arith.constant 0 : i32
    return %c0_i32, %c0_i32_0 : i32, i32
  }
  func.func @transform_8(%arg0: i32) -> (i32, i32) {
    %c0_i32 = arith.constant 0 : i32
    %c0_i32_0 = arith.constant 0 : i32
    %c0_i32_1 = arith.constant 0 : i32
    return %c0_i32, %c0_i32_0 : i32, i32
  }
  func.func @transform_9(%arg0: i32) -> (i32, i32) {
    %c0_i32 = arith.constant 0 : i32
    %c0_i32_0 = arith.constant 0 : i32
    %c0_i32_1 = arith.constant 0 : i32
    return %c0_i32, %c0_i32_0 : i32, i32
  }
  func.func @transform_10(%arg0: i32) -> (i32, i32, i32) {
    %c0_i32 = arith.constant 0 : i32
    %c0_i32_0 = arith.constant 0 : i32
    %c0_i32_1 = arith.constant 0 : i32
    return %arg0, %c0_i32, %c0_i32_0 : i32, i32, i32
  }
  func.func @transform_11(%arg0: i32) -> (i32, i32, i32) {
    %c0_i32 = arith.constant 0 : i32
    %c0_i32_0 = arith.constant 0 : i32
    %c0_i32_1 = arith.constant 0 : i32
    return %arg0, %c0_i32, %c0_i32_0 : i32, i32, i32
  }
}

</mosaic_0001>

<bundles_post_ra>
// kernel: tpu_custom_call.1
= control target key start
LH: loop header
LB: loop body
LE: loop exit
PB: predicated region body
PF: predicated region fallthrough
CT: control target
= control target key end

     0   :  { %s4448_s0 = inlined_call_operand.vmem [shape: f32[8,11,168], index: 0, kind: input, shape index: {}]   ;;  %s4449_s1 = inlined_call_operand.hbm [shape: f32[8,8,132], index: 1, kind: input, shape index: {}]   ;;  %s4450_s2 = inlined_call_operand.vmem [shape: f32[8,8,32], index: 2, kind: input, shape index: {}]   ;;  %s4451_s3 = inlined_call_operand.hbm [shape: bf16[3,168,192], index: 3, kind: input, shape index: {}]   ;;  %s4452_s4 = inlined_call_operand.hbm [shape: bf16[132,192], index: 4, kind: input, shape index: {}]   ;;  %s4453_s5 = inlined_call_operand.vmem [shape: f32[192,192], index: 5, kind: input, shape index: {}]   ;;  %s4454_s6 = inlined_call_operand.hbm [shape: f32[32,384], index: 6, kind: input, shape index: {}]   ;;  %s4455_s7 = inlined_call_operand.vmem [shape: f32[1,384], index: 7, kind: input, shape index: {}]   ;;  %s4456_s8 = inlined_call_operand.hbm [shape: f32[96,96], index: 8, kind: input, shape index: {}]   ;;  %s4457_s9 = inlined_call_operand.hbm [shape: f32[132,96], index: 9, kind: input, shape index: {}]   ;;  %s4458_s10 = inlined_call_operand.hbm [shape: f32[8,8,96], index: 10, kind: output, shape index: {0}]   ;;  %s4459_s11 = inlined_call_operand.hbm [shape: f32[8,8,96], index: 11, kind: output, shape index: {1}]  }
   0x1   :  { %4470 = sst [smem:[#allocation22_spill]] %s4451_s3 }
   0x2   :  { %4471 = sst [smem:[#allocation23_spill]] %s4455_s7 }
   0x3   :  { %4472 = sst [smem:[#allocation24_spill]] %s4458_s10 }
   0x4   :  { %4473 = sst [smem:[#allocation25_spill]] %s4459_s11 }
   0x5   :  { %17 = vsyncpa [#allocation3], 0 }
   0x6   :  { %19 = vsyncpa [#allocation3 + $0x1], 0 }
   0x7   :  { %20 = vsyncpa [#allocation6], 0 }
   0x8   :  { %21 = vsyncpa [#allocation9], 0 }
   0x9   :  { %22 = vsyncpa [#allocation12], 0 }
   0xa   :  { %23 = vsyncpa [#allocation4], 0 }
   0xb   :  { %25 = vsyncpa [#allocation4 + $0x1], 0 }
   0xc   :  { %26 = vsyncpa [#allocation15], 0 }
   0xd   :  { %28 = vsyncpa [#allocation15 + $0x1], 0  ;;  %s3530_s17 = smov 0   ;;  %s3532_s18 = smov 0  }
   0xe   :  { %s3534_s19 = smov 0   ;;  %s3536_s20 = smov 0  }
   0xf LB: > { %s3450_s21 = smov [#allocation5]   ;;  %s3551_s23 = sadd.s32 4294967295, %s3448_s20   ;;  %s3448_s20 = sphi %s3536_s20, %s4503_s20   ;;  %s3444_s19 = sphi %s3534_s19, %s4502_s19   ;;  %s3440_s18 = sphi %s3532_s18, %s4501_s18   ;;  %s3436_s17 = sphi %s3530_s17, %s4500_s17  }
  0x10   : > { %s328_s22 = sshll.u32 %s3450_s21, 4  ;;  %p2467_p0 = scmp.ge.s32.totalorder %s3448_s20, 1  ;;  %s3556_s22 = int_to_ptr.vmem [resolvable:$true] %s328_s22 }
  0x11   : > { %p4464_p1 = scmp.eq.s32.totalorder %s3551_s23, 0  ;;  %p316_p2 = scmp.lt.s32.totalorder %s3448_s20, 3 }
  0x12   : > { %s3451_s25 = smov [#allocation8]   ;;  %s3452_s28 = smov [#allocation7]  }
  0x13   : > { %p3558_p3 = pnand %p2467_p0, %p316_p2  ;;  %s357_s26 = sshll.u32 %s3451_s25, 4  ;;  %s3571_s26 = int_to_ptr.vmem [resolvable:$true] %s357_s26 }
  0x14   : > { %s3573_s29 = sshll.u32 %s3452_s28, 4  ;;  %s4476_s3 = sld [smem:[#allocation22_spill]]  ;;  %s342_s29 = int_to_ptr.vmem [resolvable:$true] %s3573_s29 }
  0x15   : > { %s4474_s24 = scalar_select %p3558_p3, 1, 0 }
  0x16   : > { %p2878_p5 = pneg %p3558_p3 }
  0x18   : > { %p3567_p6 = pnand %p2878_p5, %p4464_p1 }
  0x1a   : > { %s3168_s13 = scalar_lea.hbm %s4476_s3, 8064  ;;  %p3583_p8 = pneg %p3567_p6 }
  0x1b   : > { %p3169_p7 = scmp.ne.s32.totalorder %s4476_s3, %s3168_s13  ;;  %p3175_p11 = scmp.lt.u32.totalorder %s3168_s13, %s4476_s3 }
  0x1d   : > { %p3171_p9 = pnand %p3583_p8, %p3169_p7 }
  0x1f   : > { %p3172_p10 = pneg %p3171_p9 }
  0x21   : > { %p3177_p12 = pnand %p3175_p11, %p3172_p10 }
  0x23   : > { %3180 = shalt.err (!%p3177_p12)
}
  0x24   : > { %s3181_s28 = scalar_lea.vmem %s3556_s22, 8064  ;;  %p3189_p5 = scmp.lt.s32.totalorder %s3556_s22, %s3556_s22 }
  0x25   : > { %p3182_p13 = scmp.ne.s32.totalorder %s3556_s22, %s3181_s28  ;;  %p3190_p4 = scmp.lt.s32.totalorder %s3181_s28, %s3181_s28 }
  0x27   : > { %p3184_p0 = pnand %p3182_p13, %p3583_p8  ;;  %p3191_p7 = por %p3190_p4, %p3189_p5 }
  0x29   : > { %p3185_p2 = pneg %p3184_p0 }
  0x2b   : > { %p3192_p9 = pnand %p3191_p7, %p3185_p2 }
  0x2d   : > { %3195 = shalt.err (!%p3192_p9)
}
  0x2e   : > { %s4462_s30 = smov 128   ;;  %s3454_s12 = smov 8  }
  0x2f   : > { %2881 = dma.hbm_to_vmem [thread:$0]  (!%p3567_p6), %s4476_s3, 8064, %s3556_s22, [#allocation6], %s4462_s30, %s4462_s30, %s3454_s12  }
  0x30   : > { %s3196_s25 = scalar_lea.hbm %s4454_s6, 1536 }
  0x31   : > { %p3197_p4 = scmp.ne.s32.totalorder %s4454_s6, %s3196_s25  ;;  %p3203_p12 = scmp.lt.u32.totalorder %s3196_s25, %s4454_s6 }
  0x33   : > { %p3199_p10 = pnand %p3197_p4, %p3583_p8 }
  0x35   : > { %p3200_p11 = pneg %p3199_p10 }
  0x37   : > { %p3205_p13 = pnand %p3203_p12, %p3200_p11 }
  0x39   : > { %3208 = shalt.err (!%p3205_p13)
}
  0x3a   : > { %s3209_s22 = scalar_lea.vmem %s3571_s26, 1536  ;;  %p3217_p7 = scmp.lt.s32.totalorder %s3571_s26, %s3571_s26 }
  0x3b   : > { %p3210_p0 = scmp.ne.s32.totalorder %s3571_s26, %s3209_s22  ;;  %p3218_p9 = scmp.lt.s32.totalorder %s3209_s22, %s3209_s22 }
  0x3d   : > { %p3212_p2 = pnand %p3210_p0, %p3583_p8  ;;  %p3219_p4 = por %p3218_p9, %p3217_p7 }
  0x3f   : > { %p3213_p5 = pneg %p3212_p2 }
  0x41   : > { %p3220_p10 = pnand %p3219_p4, %p3213_p5 }
  0x43   : > { %3223 = shalt.err (!%p3220_p10)
}
  0x44   : > { %s3455_s11 = smov 384   ;;  %s3456_s7 = smov 24  }
  0x45   : > { %2887 = dma.hbm_to_vmem [thread:$0]  (!%p3567_p6), %s4454_s6, 1536, %s3571_s26, [#allocation9], %s3455_s11, %s3455_s11, %s3456_s7  }
  0x46   : > { %s3224_s21 = scalar_lea.hbm %s4452_s4, 2176 }
  0x47   : > { %p3225_p11 = scmp.ne.s32.totalorder %s4452_s4, %s3224_s21  ;;  %p3231_p0 = scmp.lt.u32.totalorder %s3224_s21, %s4452_s4 }
  0x49   : > { %p3227_p12 = pnand %p3225_p11, %p3583_p8 }
  0x4b   : > { %p3228_p13 = pneg %p3227_p12 }
  0x4d   : > { %p3233_p2 = pnand %p3231_p0, %p3228_p13 }
  0x4f   : > { %3236 = shalt.err (!%p3233_p2)
}
  0x50   : > { %s3237_s10 = scalar_lea.vmem %s342_s29, 2176  ;;  %p3245_p4 = scmp.lt.s32.totalorder %s342_s29, %s342_s29 }
  0x51   : > { %p3238_p5 = scmp.ne.s32.totalorder %s342_s29, %s3237_s10  ;;  %p3246_p10 = scmp.lt.s32.totalorder %s3237_s10, %s3237_s10 }
  0x53   : > { %p3240_p7 = pnand %p3238_p5, %p3583_p8  ;;  %p3247_p1 = por %p3246_p10, %p3245_p4 }
  0x55   : > { %p3241_p9 = pneg %p3240_p7 }
  0x57   : > { %p3248_p3 = pnand %p3247_p1, %p3241_p9 }
  0x59   : > { %3251 = shalt.err (!%p3248_p3)
}
  0x5a   : > { %s4478_s26 = smov 128   ;;  %s3457_s7 = smov [#allocation10]  }
  0x5b   : > { %2884 = dma.hbm_to_vmem [thread:$0]  (!%p3567_p6), %s4452_s4, 2176, %s342_s29, [#allocation6], %s4478_s26, %s4478_s26, %s3454_s12  }
  0x5c   : > { %s373_s13 = sshll.u32 %s3457_s7, 4  ;;  %s3458_s14 = smov [#allocation11]   ;;  %s374_s13 = int_to_ptr.vmem [resolvable:$true] %s373_s13 }
  0x5d   : > { %s386_s15 = sshll.u32 %s3458_s14, 4  ;;  %s3252_s28 = scalar_lea.hbm %s4456_s8, 1536  ;;  %s387_s15 = int_to_ptr.vmem [resolvable:$true] %s386_s15 }
  0x5e   : > { %p3253_p1 = scmp.ne.s32.totalorder %s4456_s8, %s3252_s28  ;;  %p3259_p12 = scmp.lt.u32.totalorder %s3252_s28, %s4456_s8 }
  0x60   : > { %p3255_p3 = pnand %p3253_p1, %p3583_p8 }
  0x62   : > { %p3256_p11 = pneg %p3255_p3 }
  0x64   : > { %p3261_p13 = pnand %p3259_p12, %p3256_p11 }
  0x66   : > { %3264 = shalt.err (!%p3261_p13)
}
  0x67   : > { %s3265_s29 = scalar_lea.vmem %s374_s13, 1536  ;;  %p3273_p7 = scmp.lt.s32.totalorder %s374_s13, %s374_s13 }
  0x68   : > { %p3266_p0 = scmp.ne.s32.totalorder %s374_s13, %s3265_s29  ;;  %p3274_p9 = scmp.lt.s32.totalorder %s3265_s29, %s3265_s29 }
  0x6a   : > { %p3268_p2 = pnand %p3266_p0, %p3583_p8  ;;  %p3275_p4 = por %p3274_p9, %p3273_p7 }
  0x6c   : > { %p3269_p5 = pneg %p3268_p2 }
  0x6e   : > { %p3276_p10 = pnand %p3275_p4, %p3269_p5 }
  0x70   : > { %3279 = shalt.err (!%p3276_p10)
}
  0x71   : > { %2890 = dma.hbm_to_vmem [thread:$0]  (!%p3567_p6), %s4456_s8, 1536, %s374_s13, [#allocation9], %s4478_s26, %s4478_s26, %s3454_s12  }
  0x72   : > { %s3280_s21 = scalar_lea.hbm %s4457_s9, 2176 }
  0x73   : > { %p3281_p1 = scmp.ne.s32.totalorder %s4457_s9, %s3280_s21  ;;  %p3287_p12 = scmp.lt.u32.totalorder %s3280_s21, %s4457_s9 }
  0x75   : > { %p3283_p3 = pnand %p3281_p1, %p3583_p8 }
  0x77   : > { %p3284_p11 = pneg %p3283_p3 }
  0x79   : > { %p3289_p13 = pnand %p3287_p12, %p3284_p11 }
  0x7b   : > { %3292 = shalt.err (!%p3289_p13)
}
  0x7c   : > { %s3293_s30 = scalar_lea.vmem %s387_s15, 2176  ;;  %p3301_p7 = scmp.lt.s32.totalorder %s387_s15, %s387_s15 }
  0x7d   : > { %p3294_p0 = scmp.ne.s32.totalorder %s387_s15, %s3293_s30  ;;  %p3302_p9 = scmp.lt.s32.totalorder %s3293_s30, %s3293_s30 }
  0x7f   : > { %p3296_p2 = pnand %p3294_p0, %p3583_p8  ;;  %p3303_p4 = por %p3302_p9, %p3301_p7 }
  0x81   : > { %p3297_p5 = pneg %p3296_p2 }
  0x83   : > { %p3304_p10 = pnand %p3303_p4, %p3297_p5 }
  0x85   : > { %3307 = shalt.err (!%p3304_p10)
}
  0x86   : > { %2893 = dma.hbm_to_vmem [thread:$0]  (!%p3567_p6), %s4457_s9, 2176, %s387_s15, [#allocation12], %s4478_s26, %s4478_s26, %s3454_s12  }
  0x87   : > { %s2466_s27 = sadd.s32 4294967294, %s3448_s20   ;;  %s3696_s16 = sadd.s32 1, %s3448_s20  }
  0x88   : > { %s67_s3 = sadd.s32 1, %s3444_s19  ;;  %s64_s11 = ssub.s32 %s3448_s20, %s3696_s16 }
  0x89   : > { %p74_p8 = scmp.ne.s32.totalorder %s3444_s19, %s3440_s18  ;;  %p65_p1 = scmp.eq.s32.totalorder %s64_s11, 0 }
  0x8a   : > { %p75_p3 = scmp.eq.s32.totalorder %s3448_s20, 0  ;;  %p80_p11 = scmp.ne.s32.totalorder %s3440_s18, %s3436_s17 }
  0x8b   : > { %p277_p12 = scmp.eq.s32.totalorder %s3551_s23, 1  ;;  %p4479_p0 = scmp.eq.s32.totalorder %s3551_s23, 0 }
  0x8c   : > { %s3708_s7 = scalar_select %p65_p1, %s3444_s19, %s67_s3  }
  0x8d   : > { %p76_p13 = por %p75_p3, %p74_p8  ;;  %p3712_p2 = por %p4479_p0, %p80_p11 }
  0x8e   : > { %p3716_p6 = por %p277_p12, %p74_p8  ;;  %p283_p5 = scmp.eq.s32.totalorder %s2466_s27, 1 }
  0x8f   : > { %p2910_p7 = scmp.lt.s32.totalorder %s3448_s20, 2  ;;  %s410_s26 = sand.u32 1, %s3444_s19  }
  0x90   : > { %s4481_s12 = scalar_select %p3716_p6, 1, 0 }
  0x91   : > { %p3722_p9 = por %p283_p5, %p80_p11  ;;  %s2474_s21 = sshll.u32 %s410_s26, 6 }
  0x92   : > { %s2634_s25 = sshll.u32 %s3448_s20, 10  ;;  %s414_s30 = scalar_lea.vmem [#allocation2], %s2474_s21 }
  0x93   : > { %s4482_s15 = scalar_select %p3722_p9, 1, 0 }
  0x94   : > { %s3730_s10 = scalar_lea.hbm %s4449_s1, %s2634_s25  ;;  %s422_s13 = sshll.u32 %s414_s30, 4  ;;  %s3736_s13 = int_to_ptr.vmem [resolvable:$true] %s422_s13 }
  0x95   : > { %p3732_p4 = pnand %p2910_p7, %p76_p13  ;;  %s3738_s27 = scalar_lea.sflag [#allocation3], %s410_s26 }
  0x96   : > { %s3308_s3 = scalar_lea.hbm %s3730_s10, 1024  ;;  %s3313_s25 = scalar_lea.hbm %s4449_s1, 2048 }
  0x97   : > { %p3309_p10 = scmp.ne.s32.totalorder %s3730_s10, %s3308_s3  ;;  %p3310_p8 = pneg %p3732_p4 }
  0x98   : > { %p3314_p11 = scmp.lt.u32.totalorder %s3730_s10, %s4449_s1  ;;  %p3315_p12 = scmp.lt.u32.totalorder %s3313_s25, %s3308_s3 }
  0x99   : > { %p3311_p1 = pnand %p3310_p8, %p3309_p10  ;;  %p3317_p0 = scmp.lt.u32.totalorder %s3308_s3, %s3730_s10 }
  0x9a   : > { %p3316_p13 = por %p3315_p12, %p3314_p11 }
  0x9b   : > { %p3312_p3 = pneg %p3311_p1 }
  0x9c   : > { %p3318_p5 = por %p3317_p0, %p3316_p13 }
  0x9e   : > { %p3319_p7 = pnand %p3318_p5, %p3312_p3 }
  0xa0   : > { %3322 = shalt.err (!%p3319_p7)
}
  0xa1   : > { %s3323_s26 = scalar_lea.vmem %s3736_s13, 1024  ;;  %s3459_s30 = smov [#allocation2]  }
  0xa2   : > { %p3324_p10 = scmp.ne.s32.totalorder %s3736_s13, %s3323_s26  ;;  %s3328_s11 = sshll.u32 %s3459_s30, 4  ;;  %s3329_s11 = int_to_ptr.vmem [resolvable:$false] %s3328_s11 }
  0xa3   : > { %s3330_s21 = scalar_lea.vmem %s3329_s11, 2048  ;;  %p3331_p6 = scmp.lt.s32.totalorder %s3736_s13, %s3329_s11 }
  0xa4   : > { %p3326_p1 = pnand %p3324_p10, %p3310_p8  ;;  %p3332_p11 = scmp.lt.s32.totalorder %s3330_s21, %s3323_s26 }
  0xa6   : > { %p3327_p9 = pneg %p3326_p1  ;;  %p3333_p12 = por %p3332_p11, %p3331_p6 }
  0xa8   : > { %p3334_p13 = pnand %p3333_p12, %p3327_p9 }
  0xaa   : > { %3337 = shalt.err (!%p3334_p13)
}
  0xab   : > { %s3460_s3 = smov 256   ;;  %s3461_s25 = smov 16  }
  0xac   : > { %2897 = dma.hbm_to_vmem [thread:$0]  (!%p3732_p4), %s3730_s10, 1024, %s3736_s13, %s3738_s27, %s3460_s3, %s3460_s3, %s3461_s25  }
  0xad   : > { %p4484_p8 = scmp.ne.s32.totalorder %s4474_s24, 0 }
  0xae   : > { %s3769_s28 = sand.u32 (!%p4484_p8), 1, %s3440_s18  }
  0xaf   : > { %443 = sbr.rel (%p4484_p8) target bundleno = 1353 (0x549), region = 60  ;;  %s2479_s22 = sshll.u32 (!%p4484_p8), %s3769_s28, 6 }
  0xb0   : > { %s446_s26 = scalar_lea.sflag (!%p4484_p8), [#allocation3], %s3769_s28  ;;  %s3773_s30 = scalar_lea.vmem (!%p4484_p8), [#allocation2], %s2479_s22 }
  0xb6   : > { %3411 = dma.done.wait (%p3712_p2), %s446_s26, 1024  }
  0xb7   : > { %3413 = vsyncadd (%p3712_p2), %s446_s26, 4294966272  ;;  %p4485_p6 = scmp.eq.s32.totalorder %s3551_s23, 0 }
  0xb9   : > { %3415 = dma.done.wait (%p4485_p6), [#allocation6], 10240   ;;  %p4486_p9 = pmov %p4485_p6 }
  0xba   : > { %p4487_p4 = pmov %p4485_p6 }
  0xbb   : > { %3417 = vsyncadd (%p4486_p9), [#allocation6], 4294957056 }
  0xbc   : > { %3419 = dma.done.wait (%p4487_p4), [#allocation9], 3072   ;;  %p4488_p3 = pmov %p4487_p4 }
  0xbe   : > { %3421 = vsyncadd (%p4488_p3), [#allocation9], 4294964224  ;;  %p4489_p0 = pmov %p4488_p3 }
  0xc0   : > { %3423 = dma.done.wait (%p4489_p0), [#allocation12], 2176   ;;  %p4490_p5 = pmov %p4489_p0 }
  0xc1   : > { %s2487_s24 = sshll.u32 %s3551_s23, 2  ;;  %v2966_v0 = vld [vmem:[#allocation5 + $0xac] ss:$8 sps:$4 sm:$0xff]   ;;  %v2968_v1 = vld [vmem:[#allocation5 + $0xa8] ss:$8 sps:$4 sm:$0xff]   ;;  %vm610_vm0 = vcmask 1046528  }
  0xc2   : > { %3425 = vsyncadd (%p4490_p5), [#allocation12], 4294965120  ;;  %p525_p2 = scmp.lt.s32.totalorder %s2487_s24, 7  ;;  %788 = vmatprep.subr.bf16.mxu0 %v2966_v0  ;;  %v2969_v2 = vld [vmem:[#allocation5 + $0xbc] ss:$8 sps:$4 sm:$0xff]   ;;  %vm774_vm1 = vcmask 326656  }
  0xc3   : > { %789 = vmatpush1.bf16.msra.mxu0 %v2968_v1  ;;  %v2971_v3 = vld [vmem:[#allocation5 + $0xb8] ss:$8 sps:$4 sm:$0xff]   ;;  %v2972_v4 = vld [vmem:[#allocation5 + $0xcc] ss:$8 sps:$4 sm:$0xff]   ;;  %v2974_v5 = vld [vmem:[#allocation5 + $0xc8] ss:$8 sps:$4 sm:$0xff]  }
  0xc4   : > { %s4505_s24 = smov (!%p525_p2, %s2487_s24), 7  ;;  %790 = vmatprep.subr.bf16.mxu0 %v2969_v2  ;;  %v2975_v6 = vld [vmem:[#allocation5 + $0xdc] ss:$8 sps:$4 sm:$0xff]   ;;  %v2977_v7 = vld [vmem:[#allocation5 + $0xd8] ss:$8 sps:$4 sm:$0xff]   ;;  %vm1011_vm2 = vcmask 1045504  }
  0xc5   : > { %s2635_s14 = sshll.u32 %s4505_s24, 5  ;;  %v2978_v8 = vld [vmem:[#allocation5 + $0xec] ss:$8 sps:$4 sm:$0xff]   ;;  %v2980_v9 = vld [vmem:[#allocation5 + $0xe8] ss:$8 sps:$4 sm:$0xff]   ;;  %vm781_vm3 = vcmask 1043456  }
  0xc6   : > { %s3798_s29 = scalar_lea.vmem %s4448_s0, %s2635_s14  ;;  %v2981_v18 = vld [vmem:[#allocation5 + $0xfc] ss:$8 sps:$4 sm:$0xff]   ;;  %v2983_v26 = vld [vmem:[#allocation5 + $0xf8] ss:$8 sps:$4 sm:$0xff]   ;;  %v2984_v34 = vld [vmem:[#allocation5 + $0x10c] ss:$8 sps:$4 sm:$0xff]  }
  0xc7   : > { %791 = vmatpush1.bf16.msra.mxu0 %v2971_v3  ;;  %v3801_v10 = vld [vmem:[%s3798_s29 + $0x8] sm:$0xff]  ;;  %v556_v11 = vld [vmem:[%s3798_s29 + $0x18] sm:$0x7]  ;;  %v3815_v25 = vld [vmem:[%s3798_s29] sm:$0xff]  ;;  %vm1504_vm4 = vcmask 31744   ;;  %vm1317_vm5 = vcmask 523264  }
  0xc8   : > { %792 = vmatprep.subr.bf16.mxu0 %v2972_v4  ;;  %v3805_v12 = vld [vmem:[%s3798_s29 + $0x28] sm:$0xff]  ;;  %v560_v13 = vld [vmem:[%s3798_s29 + $0x38] sm:$0x7]  ;;  %v614_v14 = vrot.slane %v3801_v10, 1  ;;  %v615_v15 = vrot.slane %v556_v11, 1  ;;  %v1015_v19 = vrot.slane %v3801_v10, 2 }
  0xc9   : > { %v620_v16 = vrot.slane %v3805_v12, 1  ;;  %v621_v17 = vrot.slane %v560_v13, 1  ;;  %v1016_v20 = vrot.slane %v556_v11, 2  ;;  %v1021_v23 = vrot.slane %v3805_v12, 2  ;;  %v555_v28 = vld [vmem:[%s3798_s29 + $0x10] sm:$0x7] }
  0xca   : > { %v616_v21 = vsel %vm610_vm0, %v614_v14, %v615_v15  ;;  %v1022_v24 = vrot.slane %v560_v13, 2  ;;  %v3819_v29 = vld [vmem:[%s3798_s29 + $0x20] sm:$0xff]  ;;  %v1012_v30 = vrot.slane %v3815_v25, 2  ;;  %v559_v31 = vld [vmem:[%s3798_s29 + $0x30] sm:$0x7]  ;;  %v1013_v32 = vrot.slane %v555_v28, 2 }
  0xcb   : > { %793 = vmatpush1.bf16.msra.mxu0 %v2974_v5  ;;  %v622_v22 = vsel %vm610_vm0, %v620_v16, %v621_v17  ;;  %v1018_v33 = vrot.slane %v3819_v29, 2  ;;  %v1019_v35 = vrot.slane %v559_v31, 2  ;;  %v3826_v36 = vsel %vm1011_vm2, %v1015_v19, %v1016_v20  ;;  %v2986_v41 = vld [vmem:[#allocation5 + $0x108] ss:$8 sps:$4 sm:$0xff]   ;;  %v2987_v43 = vld [vmem:[#allocation5 + $0x11c] ss:$8 sps:$4 sm:$0xff]  }
  0xcc   : > { %794 = vmatprep.subr.bf16.mxu0 %v2975_v6  ;;  %v644_v27 = vpack.c.bf16 %v622_v22, %v616_v21  ;;  %v3829_v37 = vsel %vm1011_vm2, %v1021_v23, %v1022_v24  ;;  %v3832_v38 = vsel %vm1011_vm2, %v1012_v30, %v1013_v32  ;;  %v2989_v44 = vld [vmem:[#allocation5 + $0x118] ss:$8 sps:$4 sm:$0xff]   ;;  %v2990_v45 = vld [vmem:[#allocation5 + $0x12c] ss:$8 sps:$4 sm:$0xff]   ;;  %v2992_v46 = vld [vmem:[#allocation5 + $0x128] ss:$8 sps:$4 sm:$0xff]  }
  0xcd   : > { %v1045_v39 = vpack.c.bf16 %v3829_v37, %v3826_v36  ;;  %v3837_v40 = vsel %vm1011_vm2, %v1018_v33, %v1019_v35  ;;  %v2993_v47 = vld [vmem:[#allocation5 + $0x13c] ss:$8 sps:$4 sm:$0xff]   ;;  %v668_v48 = vld [vmem:[#allocation5 + $0x148] sm:$0xff]  ;;  %v564_v50 = vld [vmem:[%s3798_s29 + $0x58] sm:$0x7]  ;;  %v611_v58 = vrot.slane %v3815_v25, 1 }
  0xce   : > { %2515 = vmatprep.mubr.msk.bf16.mxu0 %vm774_vm1, %v644_v27  ;;  %v1044_v42 = vpack.c.bf16 %v3837_v40, %v3832_v38  ;;  %v3842_v49 = vld [vmem:[%s3798_s29 + $0x48] sm:$0xff]  ;;  %v568_v52 = vld [vmem:[%s3798_s29 + $0x78] sm:$0x7]  ;;  %v1028_v54 = vrot.slane %v564_v50, 2  ;;  %v2513_v56 = vcombine.high %v668_v48, %v668_v48  ;;  %v2512_v57 = vcombine.low %v668_v48, %v668_v48  ;;  %v3859_v4 = vld [vmem:[%s3798_s29 + $0x40] sm:$0xff]  ;;  %s2491_s10 = sshll.u32 %s4505_s24, 3 }
  0xcf   : > { %795 = vmatpush1.bf16.msra.mxu0 %v2977_v7  ;;  %v3846_v51 = vld [vmem:[%s3798_s29 + $0x68] sm:$0xff]  ;;  %v1027_v53 = vrot.slane %v3842_v49, 2  ;;  %v2995_v55 = vld [vmem:[#allocation5 + $0x138] ss:$8 sps:$4 sm:$0xff]   ;;  %v612_v59 = vrot.slane %v555_v28, 1  ;;  %v617_v60 = vrot.slane %v3819_v29, 1  ;;  %s536_s27 = scalar_lea.vmem %s4450_s2, %s2491_s10 }
  0xd0   : > { %796 = vmatprep.subr.bf16.mxu0 %v2978_v8  ;;  %v618_v61 = vrot.slane %v559_v31, 1  ;;  %v626_v62 = vrot.slane %v3842_v49, 1  ;;  %v627_v63 = vrot.slane %v564_v50, 1  ;;  %v632_v0 = vrot.slane %v3846_v51, 1  ;;  %v563_v7 = vld [vmem:[%s3798_s29 + $0x50] sm:$0x7] }
  0xd1   : > { %v633_v1 = vrot.slane %v568_v52, 1  ;;  %v3855_v2 = vsel %vm1011_vm2, %v1027_v53, %v1028_v54  ;;  %v1033_v3 = vrot.slane %v3846_v51, 2  ;;  %v783_v5 = vsel %vm781_vm3, %v2512_v57, 0  ;;  %v3865_v8 = vld [vmem:[%s3798_s29 + $0x60] sm:$0xff]  ;;  %v567_v14 = vld [vmem:[%s3798_s29 + $0x70] sm:$0x7] }
  0xd2   : > { %v613_v6 = vsel %vm610_vm0, %v611_v58, %v612_v59  ;;  %v619_v11 = vsel %vm610_vm0, %v617_v60, %v618_v61  ;;  %v628_v13 = vsel %vm610_vm0, %v626_v62, %v627_v63  ;;  %v1024_v15 = vrot.slane %v3859_v4, 2  ;;  %v3000_v17 = vld [vmem:[#allocation5 + $0x4] ss:$8 sps:$4 sm:$0xff]   ;;  %v2998_v30 = vld [vmem:[#allocation5] ss:$8 sps:$4 sm:$0xff]   ;;  %v1272_v48 = vld [vmem:[%s4453_s5 + $0x18] sm:$0xff] }
  0xd3   : > { %797 = vmatpush1.bf16.msra.mxu0 %v2980_v9  ;;  %v1034_v9 = vrot.slane %v568_v52, 2  ;;  %v1025_v16 = vrot.slane %v563_v7, 2  ;;  %v1030_v20 = vrot.slane %v3865_v8, 2  ;;  %v1031_v21 = vrot.slane %v567_v14, 2  ;;  %v3003_v35 = vld [vmem:[#allocation5 + $0x14] ss:$8 sps:$4 sm:$0xff]  }
  0xd4   : > { %798 = vmatprep.subr.bf16.mxu0 %v2981_v18  ;;  %v634_v18 = vsel %vm610_vm0, %v632_v0, %v633_v1  ;;  %v643_v24 = vpack.c.bf16 %v619_v11, %v613_v6  ;;  %v624_v27 = vrot.slane %v563_v7, 1  ;;  %v629_v32 = vrot.slane %v3865_v8, 1  ;;  %v1269_v50 = vld [vmem:[%s4453_s5] sm:$0xff]  ;;  %v1271_v52 = vld [vmem:[%s4453_s5 + $0x10] sm:$0xff]  ;;  %v1276_v57 = vld [vmem:[%s4453_s5 + $0x38] sm:$0xff]  ;;  %s4491_s11 = sld [smem:[#allocation23_spill]] }
  0xd5   : > { %v3874_v19 = vsel %vm1011_vm2, %v1033_v3, %v1034_v9  ;;  %v3880_v23 = vsel %vm1011_vm2, %v1024_v15, %v1025_v16  ;;  %v3884_v28 = vsel %vm1011_vm2, %v1030_v20, %v1031_v21  ;;  %v646_v31 = vpack.c.bf16 %v634_v18, %v628_v13  ;;  %v1273_v58 = vld [vmem:[%s4453_s5 + $0x20] sm:$0xff]  ;;  %v1275_v61 = vld [vmem:[%s4453_s5 + $0x30] sm:$0xff]  ;;  %v1278_v62 = vld [vmem:[%s4453_s5 + $0x48] sm:$0xff]  ;;  %s3463_s21 = smov 64   ;;  %s3465_s3 = smov 32  }
  0xd6   : > { %v1047_v22 = vpack.c.bf16 %v3874_v19, %v3855_v2  ;;  %v630_v33 = vrot.slane %v567_v14, 1  ;;  %v570_v59 = vpack.c.bf16 %v3805_v12, %v3801_v10  ;;  %v1280_v63 = vld [vmem:[%s4453_s5 + $0x58] sm:$0xff]  ;;  %v2712_v1 = vpack.c.bf16 %v1275_v61, %v1273_v58  ;;  %v1277_v12 = vld [vmem:[%s4453_s5 + $0x40] sm:$0xff]  ;;  %v1279_v3 = vld [vmem:[%s4453_s5 + $0x50] sm:$0xff]  ;;  %s2485_s25 = sshll.u32 %s3769_s28, 5  ;;  %s4467_s14 = sshll.u32 %s3551_s23, 9 }
  0xd7   : > { %799 = vmatpush1.bf16.msra.mxu0 %v2983_v26  ;;  %v623_v26 = vrot.slane %v3859_v4, 1  ;;  %v3009_v0 = vld [vmem:[#allocation5 + $0x34] ss:$8 sps:$4 sm:$0xff]   ;;  %v2714_v10 = vpack.c.bf16 %v1280_v63, %v1278_v62  ;;  %v1282_v6 = vld [vmem:[%s4453_s5 + $0x68] sm:$0xff]  ;;  %v2716_v11 = vpack.c.bf16 %v1279_v3, %v1277_v12  ;;  %v1281_v14 = vld [vmem:[%s4453_s5 + $0x60] sm:$0xff]  ;;  %vm1511_vm6 = vcmask 1041408  }
  0xd8   : > { %800 = vmatprep.subr.bf16.mxu0 %v2984_v34  ;;  %v1046_v34 = vpack.c.bf16 %v3884_v28, %v3880_v23  ;;  %v1284_v7 = vld [vmem:[%s4453_s5 + $0x78] sm:$0xff]  ;;  %v3012_v9 = vld [vmem:[#allocation5 + $0x44] ss:$8 sps:$4 sm:$0xff]   ;;  %v1283_v15 = vld [vmem:[%s4453_s5 + $0x70] sm:$0xff]  ;;  %vm1600_vm7 = vcmask 261120   ;;  %vm2048_vm8 = vcmask 785408  }
  0xd9   : > { %v2718_v13 = vpack.c.bf16 %v1284_v7, %v1282_v6  ;;  %v3010_v16 = vld [vmem:[#allocation5 + $0x40] ss:$8 sps:$4 sm:$0xff]   ;;  %v1288_v18 = vld [vmem:[%s4453_s5 + $0x98] sm:$0xff]  ;;  %v2720_v21 = vpack.c.bf16 %v1283_v15, %v1281_v14  ;;  %v3024_v58 = vld [vmem:[#allocation5 + $0x84] ss:$8 sps:$4 sm:$0xff]   ;;  %s4322_s22 = scalar_lea.vmem [#allocation13], %s2485_s25 }
  0xda   : > { %v3015_v20 = vld [vmem:[#allocation5 + $0x54] ss:$8 sps:$4 sm:$0xff]   ;;  %v1297_v61 = vld [vmem:[%s4453_s5 + $0xe0] sm:$0xff]  ;;  %v3054_v37 = vld [vmem:[#allocation5 + $0x1d0] ss:$8 sps:$4 sm:$0xff]   ;;  %s2273_s26 = sshll.u32 %s4322_s22, 4  ;;  %s4351_s26 = int_to_ptr.vmem [resolvable:$true] %s2273_s26 }
  0xdb   : > { %801 = vmatpush1.bf16.msra.mxu0 %v2986_v41  ;;  %v3001_v41 = vld [vmem:[#allocation5 + $0x10] ss:$8 sps:$4 sm:$0xff]   ;;  %v3022_v63 = vld [vmem:[#allocation5 + $0x80] ss:$8 sps:$4 sm:$0xff]   ;;  %v3056_v36 = vld [vmem:[#allocation5 + $0x1d4] ss:$8 sps:$4 sm:$0xff]  }
  0xdc   : > { %802 = vmatprep.subr.bf16.mxu0 %v2987_v43  ;;  %v625_v43 = vsel %vm610_vm0, %v623_v26, %v624_v27  ;;  %v1285_v27 = vld [vmem:[%s4453_s5 + $0x80] sm:$0xff]  ;;  %v1299_v62 = vld [vmem:[%s4453_s5 + $0xf0] sm:$0xff]  ;;  %s4492_s29 = sld [smem:[#allocation24_spill]]  ;;  %s3338_s24 = scalar_lea.vmem %s4351_s26, 512 }
  0xdd   : > { %v593_v12 = vld [vmem:[#allocation5 + $0xa0] sm:$0xff]  ;;  %v2736_v3 = vpack.c.bf16 %v1299_v62, %v1297_v61  ;;  %v1303_v7 = vld [vmem:[%s4453_s5 + $0x110] sm:$0xff]  ;;  %p3339_p7 = scmp.ne.s32.totalorder %s4351_s26, %s3338_s24  ;;  %p4493_p10 = scmp.ne.s32.totalorder %s4481_s12, 0 }
  0xde   : > { %v1301_v6 = vld [vmem:[%s4453_s5 + $0x100] sm:$0xff]  ;;  %v2538_v14 = vcombine.high %v593_v12, %v593_v12  ;;  %v2537_v15 = vcombine.low %v593_v12, %v593_v12  ;;  %v1069_v62 = vld [vmem:[#allocation5 + $0x1f0] sm:$0xff] }
  0xdf   : > { %803 = vmatpush1.bf16.msra.mxu0 %v2989_v44  ;;  %v631_v44 = vsel %vm610_vm0, %v629_v32, %v630_v33  ;;  %v1290_v32 = vld [vmem:[%s4453_s5 + $0xa8] sm:$0xff]  ;;  %v1292_v33 = vld [vmem:[%s4453_s5 + $0xb8] sm:$0xff]  ;;  %p3340_p1 = pnand %p3339_p7, %p4493_p10 }
  0xe0   : > { %804 = vmatprep.subr.bf16.mxu0 %v2990_v45  ;;  %v3006_v45 = vld [vmem:[#allocation5 + $0x24] ss:$8 sps:$4 sm:$0xff]   ;;  %v645_v53 = vpack.c.bf16 %v631_v44, %v625_v43  ;;  %v3016_v43 = vld [vmem:[#allocation5 + $0x60] ss:$8 sps:$4 sm:$0xff]  }
  0xe1   : > { %v3051_v61 = vld [vmem:[#allocation5 + $0x1c0] ss:$8 sps:$4 sm:$0xff]   ;;  %v3064_v12 = vld [vmem:[#allocation7 + $0x4] ss:$8 sps:$4 sm:$0xff]   ;;  %p3341_p11 = pneg %p3340_p1 }
  0xe2   : > { %v3062_v38 = vld [vmem:[#allocation7] ss:$8 sps:$4 sm:$0xff]   ;;  %v3070_v23 = vld [vmem:[#allocation7 + $0x24] ss:$8 sps:$4 sm:$0xff]  }
  0xe3   : > { %805 = vmatpush1.bf16.msra.mxu0 %v2992_v46  ;;  %v1270_v46 = vld [vmem:[%s4453_s5 + $0x8] sm:$0xff] }
  0xe4   : > { %806 = vmatprep.subr.bf16.mxu0 %v2993_v47  ;;  %v3004_v47 = vld [vmem:[#allocation5 + $0x20] ss:$8 sps:$4 sm:$0xff]   ;;  %v2706_v54 = vpack.c.bf16 %v1272_v48, %v1270_v46  ;;  %v1296_v46 = vld [vmem:[%s4453_s5 + $0xd8] sm:$0xff]  ;;  %v2726_v48 = vpack.c.bf16 %v1292_v33, %v1290_v32 }
  0xe5   : > { %v1309_v33 = vld [vmem:[%s4453_s5 + $0x140] sm:$0xff] }
  0xe6   : > { %2707 = vmatprep.subr.bf16.mxu1 %v2706_v54  ;;  %v1295_v54 = vld [vmem:[%s4453_s5 + $0xd0] sm:$0xff] }
  0xe7   : > { %807 = vmatpush1.bf16.msra.mxu0 %v2995_v55  ;;  %v2708_v55 = vpack.c.bf16 %v1271_v52, %v1269_v50 }
  0xe8   : > { %2514 = vmatprep.subr.msk.bf16.mxu0 %vm781_vm3, %v2513_v56  ;;  %v1274_v56 = vld [vmem:[%s4453_s5 + $0x28] sm:$0xff] }
  0xe9   : > { %v2710_v60 = vpack.c.bf16 %v1276_v57, %v1274_v56  ;;  %2709 = vmatpush1.bf16.msra.mxu1 %v2708_v55  ;;  %v3019_v55 = vld [vmem:[#allocation5 + $0x70] ss:$8 sps:$4 sm:$0xff]   ;;  %v1298_v56 = vld [vmem:[%s4453_s5 + $0xe8] sm:$0xff] }
  0xea   : > { %v1300_v57 = vld [vmem:[%s4453_s5 + $0xf8] sm:$0xff] }
  0xeb   : > { %809 = vmatpush1.bf16.msra.mxu0 %v783_v5  ;;  %2711 = vmatprep.subr.bf16.mxu1 %v2710_v60  ;;  %v3007_v5 = vld [vmem:[#allocation5 + $0x30] ss:$8 sps:$4 sm:$0xff]   ;;  %v2734_v60 = vpack.c.bf16 %v1300_v57, %v1298_v56  ;;  %v3044_v56 = vld [vmem:[#allocation5 + $0x194] ss:$8 sps:$4 sm:$0xff]  }
  0xec   : > { %958 = vmatprep.subr.bf16.mxu0 %v3000_v17  ;;  %v1286_v17 = vld [vmem:[%s4453_s5 + $0x88] sm:$0xff]  ;;  %v3042_v57 = vld [vmem:[#allocation5 + $0x190] ss:$8 sps:$4 sm:$0xff]  }
  0xed   : > { %2713 = vmatpush1.bf16.msra.mxu1 %v2712_v1  ;;  %v2722_v26 = vpack.c.bf16 %v1288_v18, %v1286_v17  ;;  %v1304_v1 = vld [vmem:[%s4453_s5 + $0x118] sm:$0xff]  ;;  %v1305_v18 = vld [vmem:[%s4453_s5 + $0x120] sm:$0xff] }
  0xee   : > { %821 = vmatmul.mubr.bf16.vlgmr.msra.gmra.mrb[0].mxu0 %v643_v24  ;;  %2715 = vmatprep.subr.bf16.mxu1 %v2714_v10  ;;  %v3013_v24 = vld [vmem:[#allocation5 + $0x50] ss:$8 sps:$4 sm:$0xff]   ;;  %v3027_v10 = vld [vmem:[#allocation5 + $0x94] ss:$8 sps:$4 sm:$0xff]  }
  0xef   : > { %959 = vmatpush1.bf16.msra.mxu0 %v2998_v30  ;;  %2516 = vmatprep.mubr.msk.bf16.mxu0 %vm774_vm1, %v646_v31  ;;  %v1287_v30 = vld [vmem:[%s4453_s5 + $0x90] sm:$0xff]  ;;  %v3018_v31 = vld [vmem:[#allocation5 + $0x64] ss:$8 sps:$4 sm:$0xff]  }
  0xf0   : > { %960 = vmatprep.subr.bf16.mxu0 %v3003_v35  ;;  %v1289_v35 = vld [vmem:[%s4453_s5 + $0xa0] sm:$0xff]  ;;  %v2724_v44 = vpack.c.bf16 %v1287_v30, %v1285_v27  ;;  %v3032_v27 = vld [vmem:[#allocation5 + $0x154] ss:$8 sps:$4 sm:$0xff]  }
  0xf1   : > { %2717 = vmatpush1.bf16.msra.mxu1 %v2716_v11  ;;  %v1306_v11 = vld [vmem:[%s4453_s5 + $0x128] sm:$0xff] }
  0xf2   : > { %2719 = vmatprep.subr.bf16.mxu1 %v2718_v13  ;;  %v1308_v13 = vld [vmem:[%s4453_s5 + $0x138] sm:$0xff] }
  0xf3   : > { %961 = vmatpush1.bf16.msra.mxu0 %v3001_v41  ;;  %v1291_v41 = vld [vmem:[%s4453_s5 + $0xb0] sm:$0xff]  ;;  %v2742_v17 = vpack.c.bf16 %v1308_v13, %v1306_v11 }
  0xf4   : > { %962 = vmatprep.subr.bf16.mxu0 %v3006_v45  ;;  %v1294_v45 = vld [vmem:[%s4453_s5 + $0xc8] sm:$0xff]  ;;  %v2728_v50 = vpack.c.bf16 %v1291_v41, %v1289_v35  ;;  %v1311_v35 = vld [vmem:[%s4453_s5 + $0x150] sm:$0xff] }
  0xf5   : > { %2721 = vmatpush1.bf16.msra.mxu1 %v2720_v21  ;;  %v2730_v52 = vpack.c.bf16 %v1296_v46, %v1294_v45  ;;  %v1310_v21 = vld [vmem:[%s4453_s5 + $0x148] sm:$0xff]  ;;  %v3030_v41 = vld [vmem:[#allocation5 + $0x150] ss:$8 sps:$4 sm:$0xff]   ;;  %v2748_v45 = vpack.c.bf16 %v1311_v35, %v1309_v33  ;;  %v1575_v35 = vld [vmem:[#allocation8 + $0x20] sm:$0xff] }
  0xf6   : > { %831 = vmatmul.mubr.bf16.gmra.mrb[4].mxu0 %v645_v53  ;;  %2723 = vmatprep.subr.bf16.mxu1 %v2722_v26  ;;  %v1293_v53 = vld [vmem:[%s4453_s5 + $0xc0] sm:$0xff]  ;;  %v953_v26 = vsel %vm781_vm3, %v2537_v15, 0  ;;  %v1572_v33 = vld [vmem:[#allocation8 + $0x8] sm:$0xff] }
  0xf7   : > { %963 = vmatpush1.bf16.msra.mxu0 %v3004_v47  ;;  %2540 = vmatprep.mubr.msk.bf16.mxu0 %vm774_vm1, %v570_v59  ;;  %v3021_v47 = vld [vmem:[#allocation5 + $0x74] ss:$8 sps:$4 sm:$0xff]   ;;  %v2732_v59 = vpack.c.bf16 %v1295_v54, %v1293_v53  ;;  %v3036_v53 = vld [vmem:[#allocation5 + $0x170] ss:$8 sps:$4 sm:$0xff]   ;;  %v3041_v54 = vld [vmem:[#allocation5 + $0x184] ss:$8 sps:$4 sm:$0xff]  }
  0xf8   : > { %964 = vmatprep.subr.bf16.mxu0 %v3009_v0  ;;  %v1302_v0 = vld [vmem:[%s4453_s5 + $0x108] sm:$0xff] }
  0xf9   : > { %2725 = vmatpush1.bf16.msra.mxu1 %v2724_v44  ;;  %v1314_v44 = vld [vmem:[%s4453_s5 + $0x168] sm:$0xff] }
  0xfa   : > { %2727 = vmatprep.subr.bf16.mxu1 %v2726_v48  ;;  %v3038_v48 = vld [vmem:[#allocation5 + $0x174] ss:$8 sps:$4 sm:$0xff]  }
  0xfb   : > { %965 = vmatpush1.bf16.msra.mxu0 %v3007_v5  ;;  %v2738_v5 = vpack.c.bf16 %v1304_v1, %v1302_v0  ;;  %v2563_v0 = vcombine.high %v1069_v62, %v1069_v62  ;;  %v2562_v1 = vcombine.low %v1069_v62, %v1069_v62 }
  0xfc   : > { %966 = vmatprep.subr.bf16.mxu0 %v3012_v9  ;;  %v3025_v9 = vld [vmem:[#allocation5 + $0x90] ss:$8 sps:$4 sm:$0xff]  }
  0xfd   : > { %2729 = vmatpush1.bf16.msra.mxu1 %v2728_v50 }
  0xfe   : > { %2731 = vmatprep.subr.bf16.mxu1 %v2730_v52  ;;  %v571_v52 = vpack.c.bf16 %v3865_v8, %v3859_v4  ;;  %v3047_v4 = vld [vmem:[#allocation5 + $0x1a4] ss:$8 sps:$4 sm:$0xff]   ;;  %v3045_v8 = vld [vmem:[#allocation5 + $0x1a0] ss:$8 sps:$4 sm:$0xff]  }
  0xff   : > { %967 = vmatpush1.bf16.msra.mxu0 %v3010_v16  ;;  %v2740_v16 = vpack.c.bf16 %v1303_v7, %v1301_v6  ;;  %v3073_v7 = vld [vmem:[#allocation7 + $0x34] ss:$8 sps:$4 sm:$0xff]  }
 0x100   : > { %968 = vmatprep.subr.bf16.mxu0 %v3015_v20  ;;  %v1307_v20 = vld [vmem:[%s4453_s5 + $0x130] sm:$0xff] }
 0x101   : > { %2733 = vmatpush1.bf16.msra.mxu1 %v2732_v59  ;;  %v2744_v30 = vpack.c.bf16 %v1307_v20, %v1305_v18  ;;  %v3048_v59 = vld [vmem:[#allocation5 + $0x1b0] ss:$8 sps:$4 sm:$0xff]   ;;  %v3079_v18 = vld [vmem:[#allocation7 + $0x54] ss:$8 sps:$4 sm:$0xff]  }
 0x102   : > { %2735 = vmatprep.subr.bf16.mxu1 %v2734_v60  ;;  %v3053_v60 = vld [vmem:[#allocation5 + $0x1c4] ss:$8 sps:$4 sm:$0xff]   ;;  %v3077_v20 = vld [vmem:[#allocation7 + $0x50] ss:$8 sps:$4 sm:$0xff]  }
 0x103   : > { %969 = vmatpush1.bf16.msra.mxu0 %v3013_v24  ;;  %v1312_v24 = vld [vmem:[%s4453_s5 + $0x158] sm:$0xff] }
 0x104   : > { %970 = vmatprep.subr.bf16.mxu0 %v3018_v31  ;;  %v569_v31 = vpack.c.bf16 %v3819_v29, %v3815_v25  ;;  %v2746_v32 = vpack.c.bf16 %v1312_v24, %v1310_v21  ;;  %v1316_v25 = vld [vmem:[%s4453_s5 + $0x178] sm:$0xff]  ;;  %v3035_v29 = vld [vmem:[#allocation5 + $0x164] ss:$8 sps:$4 sm:$0xff]  }
 0x105   : > { %2737 = vmatpush1.bf16.msra.mxu1 %v2736_v3  ;;  %v2750_v46 = vpack.c.bf16 %v1316_v25, %v1314_v44  ;;  %v542_v3 = vld [vmem:[%s3773_s30 + $0x8] sm:$0xff]  ;;  %v3082_v21 = vld [vmem:[#allocation7 + $0x64] ss:$8 sps:$4 sm:$0xff]   ;;  %v3080_v24 = vld [vmem:[#allocation7 + $0x60] ss:$8 sps:$4 sm:$0xff]  }
 0x106   : > { %2739 = vmatprep.subr.bf16.mxu1 %v2738_v5  ;;  %v1571_v44 = vld [vmem:[#allocation8] sm:$0xff] }
 0x107   : > { %971 = vmatpush1.bf16.msra.mxu0 %v3016_v43  ;;  %v572_v43 = vpack.c.bf16 %v3846_v51, %v3842_v49  ;;  %v1315_v49 = vld [vmem:[%s4453_s5 + $0x170] sm:$0xff]  ;;  %v3033_v51 = vld [vmem:[#allocation5 + $0x160] ss:$8 sps:$4 sm:$0xff]  }
 0x108   : > { %972 = vmatprep.subr.bf16.mxu0 %v3021_v47  ;;  %v1313_v47 = vld [vmem:[%s4453_s5 + $0x160] sm:$0xff] }
 0x109   : > { %2741 = vmatpush1.bf16.msra.mxu1 %v2740_v16  ;;  %v2752_v50 = vpack.c.bf16 %v1315_v49, %v1313_v47  ;;  %v3076_v16 = vld [vmem:[#allocation7 + $0x44] ss:$8 sps:$4 sm:$0xff]  }
 0x10a   : > { %2743 = vmatprep.subr.bf16.mxu1 %v2742_v17  ;;  %v3074_v17 = vld [vmem:[#allocation7 + $0x40] ss:$8 sps:$4 sm:$0xff]  }
 0x10b   : > { %973 = vmatpush1.bf16.msra.mxu0 %v3019_v55  ;;  %v3039_v55 = vld [vmem:[#allocation5 + $0x180] ss:$8 sps:$4 sm:$0xff]   ;;  %v4109_v47 = vld [vmem:[%s3773_s30 + $0x38] sm:$0xff] }
 0x10c   : > { %974 = vmatprep.subr.bf16.mxu0 %v3024_v58  ;;  %v3050_v58 = vld [vmem:[#allocation5 + $0x1b4] ss:$8 sps:$4 sm:$0xff]  }
 0x10d   : > { %2745 = vmatpush1.bf16.msra.mxu1 %v2744_v30  ;;  %v3083_v30 = vld [vmem:[#allocation7 + $0x70] ss:$8 sps:$4 sm:$0xff]   ;;  %v1578_v49 = vld [vmem:[#allocation8 + $0x38] sm:$0xff] }
 0x10e   : > { %2747 = vmatprep.subr.bf16.mxu1 %v2746_v32 }
 0x10f   : > { %975 = vmatpush1.bf16.msra.mxu0 %v3022_v63  ;;  %v3057_v63 = vld [vmem:[#allocation5 + $0x1e0] ss:$8 sps:$4 sm:$0xff]  }
 0x110   : > { %976 = vmatprep.subr.bf16.mxu0 %v3027_v10  ;;  %v1182_v10 = vsel %vm781_vm3, %v2562_v1, 0  ;;  %v552_v1 = vld [vmem:[%s536_s27 + $0x18] sm:$0xff] }
 0x111   : > { %2749 = vmatpush1.bf16.msra.mxu1 %v2748_v45  ;;  %v1574_v45 = vld [vmem:[#allocation8 + $0x18] sm:$0xff] }
 0x112   : > { %2751 = vmatprep.subr.bf16.mxu1 %v2750_v46  ;;  %v4106_v46 = vld [vmem:[%s3773_s30 + $0x28] sm:$0xff] }
 0x113   : > { %977 = vmatpush1.bf16.msra.mxu0 %v3025_v9  ;;  %v4085_v9 = vld [vmem:[%s3773_s30 + $0x18] sm:$0xff] }
 0x114   : > { %2539 = vmatprep.subr.msk.bf16.mxu0 %vm781_vm3, %v2538_v14  ;;  %v3071_v14 = vld [vmem:[#allocation7 + $0x30] ss:$8 sps:$4 sm:$0xff]   ;;  %v1249_v15 = vpack.c.bf16 %v4085_v9, %v542_v3 }
 0x115   : > { %2753 = vmatpush1.bf16.msra.mxu1 %v2752_v50  ;;  %v2756_v50 = vpack.c.bf16 %v1574_v45, %v1571_v44 }
 0x116   : > { %1518 = vmatprep.subr.bf16.mxu1 %v3064_v12 }
 0x117   : > { %979 = vmatpush1.bf16.msra.mxu0 %v953_v26  ;;  %v3085_v26 = vld [vmem:[#allocation7 + $0x74] ss:$8 sps:$4 sm:$0xff]  }
 0x118   : > { %1187 = vmatprep.subr.bf16.mxu0 %v3032_v27  ;;  %v1268_v27 = vld [vmem:[#allocation7 + $0x80] sm:$0x33] }
 0x119   : > { %v2587_v32 = vcombine.low %v1268_v27, %v1268_v27 }
 0x11a   : > { %991 = vmatmul.mubr.bf16.vlgmr.msra.gmra.mrb[0].mxu0 %v569_v31  ;;  %v2588_v31 = vcombine.high %v1268_v27, %v1268_v27 }
 0x11b   : > { %1188 = vmatpush1.bf16.msra.mxu0 %v3030_v41  ;;  %2541 = vmatprep.mubr.msk.bf16.mxu0 %vm774_vm1, %v572_v43  ;;  %v4100_v41 = vld [vmem:[%s3773_s30] sm:$0xff]  ;;  %v4103_v43 = vld [vmem:[%s3773_s30 + $0x10] sm:$0xff]  ;;  %v1513_v25 = vsel %vm1511_vm6, %v2587_v32, 0 }
 0x11c   : > { %1189 = vmatprep.subr.bf16.mxu0 %v3035_v29  ;;  %v2754_v29 = vpack.c.bf16 %v1575_v35, %v1572_v33 }
 0x11f   : > { %1190 = vmatpush1.bf16.msra.mxu0 %v3033_v51  ;;  %v1581_v51 = vld [vmem:[#allocation8 + $0x50] sm:$0xff] }
 0x120   : > { %1191 = vmatprep.subr.bf16.mxu0 %v3038_v48  ;;  %v1248_v48 = vpack.c.bf16 %v4103_v43, %v4100_v41 }
 0x122   : > { %1001 = vmatmul.mubr.bf16.gmra.mrb[4].mxu0 %v571_v52  ;;  %v1251_v52 = vpack.c.bf16 %v4109_v47, %v4106_v46 }
 0x123   : > { %1192 = vmatpush1.bf16.msra.mxu0 %v3036_v53  ;;  %2565 = vmatprep.mubr.msk.bf16.mxu0 %vm774_vm1, %v1045_v39  ;;  %v3059_v39 = vld [vmem:[#allocation5 + $0x1e4] ss:$8 sps:$4 sm:$0xff]   ;;  %v2758_v53 = vpack.c.bf16 %v1581_v51, %v1578_v49 }
 0x124   : > { %1193 = vmatprep.subr.bf16.mxu0 %v3041_v54  ;;  %v1577_v54 = vld [vmem:[#allocation8 + $0x30] sm:$0xff] }
 0x127   : > { %1194 = vmatpush1.bf16.msra.mxu0 %v3039_v55  ;;  %v1580_v55 = vld [vmem:[#allocation8 + $0x48] sm:$0xff] }
 0x128   : > { %1195 = vmatprep.subr.bf16.mxu0 %v3044_v56  ;;  %v1573_v56 = vld [vmem:[#allocation8 + $0x10] sm:$0xff] }
 0x12b   : > { %1196 = vmatpush1.bf16.msra.mxu0 %v3042_v57  ;;  %v1576_v57 = vld [vmem:[#allocation8 + $0x28] sm:$0xff] }
 0x12c   : > { %1197 = vmatprep.subr.bf16.mxu0 %v3047_v4  ;;  %v4117_v4 = vld [vmem:[%s3773_s30 + $0x20] sm:$0xff] }
 0x12f   : > { %1198 = vmatpush1.bf16.msra.mxu0 %v3045_v8  ;;  %v4120_v8 = vld [vmem:[%s3773_s30 + $0x30] sm:$0xff]  ;;  %s2255_s30 = scalar_lea.sflag [#allocation4], %s3769_s28 }
 0x130   : > { %1199 = vmatprep.subr.bf16.mxu0 %v3050_v58  ;;  %v2760_v58 = vpack.c.bf16 %v1580_v55, %v1577_v54 }
 0x133   : > { %1200 = vmatpush1.bf16.msra.mxu0 %v3048_v59  ;;  %v2762_v59 = vpack.c.bf16 %v1576_v57, %v1573_v56 }
 0x134   : > { %1201 = vmatprep.subr.bf16.mxu0 %v3053_v60  ;;  %v1250_v60 = vpack.c.bf16 %v4120_v8, %v4117_v4 }
 0x137   : > { %1202 = vmatpush1.bf16.msra.mxu0 %v3051_v61  ;;  %v3462_v61 = vmov 0.0  }
 0x138   : > { %1203 = vmatprep.subr.bf16.mxu0 %v3056_v36  ;;  %v1579_v36 = vld [vmem:[#allocation8 + $0x40] sm:$0xff] }
 0x13b   : > { %1204 = vmatpush1.bf16.msra.mxu0 %v3054_v37  ;;  %v1582_v37 = vld [vmem:[#allocation8 + $0x58] sm:$0xff] }
 0x13c   : > { %1205 = vmatprep.subr.bf16.mxu0 %v3059_v39  ;;  %v549_v39 = vld [vmem:[%s536_s27] sm:$0xff]  ;;  %v2766_v62 = vpack.c.bf16 %v1582_v37, %v1579_v36 }
 0x13f   : > { %1206 = vmatpush1.bf16.msra.mxu0 %v3057_v63  ;;  %v550_v63 = vld [vmem:[%s536_s27 + $0x8] sm:$0xff] }
 0x140   : > { %2564 = vmatprep.subr.msk.bf16.mxu0 %vm781_vm3, %v2563_v0  ;;  %v551_v0 = vld [vmem:[%s536_s27 + $0x10] sm:$0xff]  ;;  %s4359_s27 = scalar_lea.hbm %s4492_s29, %s4467_s14 }
 0x143   : > { %1208 = vmatpush1.bf16.msra.mxu0 %v1182_v10  ;;  %v1585_v10 = vlaneseq }
 0x145   : > { %v1586_v12 = vshrl.u32 %v1585_v10, 7 }
 0x146   : > { %1220 = vmatmul.mubr.bf16.vlgmr.msra.gmra.mrb[0].mxu0 %v1044_v42  ;;  %v3067_v42 = vld [vmem:[#allocation7 + $0x14] ss:$8 sps:$4 sm:$0xff]  }
 0x147   : > { %2566 = vmatprep.mubr.msk.bf16.mxu0 %vm774_vm1, %v1047_v22  ;;  %v3065_v22 = vld [vmem:[#allocation7 + $0x10] ss:$8 sps:$4 sm:$0xff]  }
 0x14e   : > { %1230 = vmatmul.mubr.bf16.gmra.mrb[4].mxu0 %v1046_v34  ;;  %v3068_v34 = vld [vmem:[#allocation7 + $0x20] ss:$8 sps:$4 sm:$0xff]  }
 0x14f   : > { %2621 = vmatprep.mubr.msk.f32.mxu0 %vm1504_vm4, %v542_v3  ;;  %v1583_v3 = vld [vmem:[%s4491_s11] sm:$0x7]  ;;  %s3466_s11 = smov [#allocation13]  }
 0x219   : > { %v4066_v5 = vpop.f32.mrb[0].mxu0 }
 0x21a   : > { %v4068_v40 = vpop.f32.mrb[1].mxu0 }
 0x21b   : > { %v4070_v2 = vpop.f32.mrb[2].mxu0  ;;  %2567 = vmatprep.mubr.msk.f32.mxu1 %vm1317_vm5, %v4068_v40 }
 0x21c   : > { %v4074_v19 = vpop.f32.mrb[3].mxu0  ;;  %1395 = vmatmul.mubr.f32.vlgmr.msra.gmra.mrb[0].mxu1 %v4066_v5 }
 0x21d   : > { %1519 = vmatpush1.bf16.msra.mxu1 %v3062_v38  ;;  %2568 = vmatprep.mubr.msk.f32.mxu1 %vm1317_vm5, %v4074_v19  ;;  %v1587_v38 = vsub.s32 0, %v1586_v12 }
 0x21e   : > { %1520 = vmatprep.subr.bf16.mxu1 %v3067_v42 }
 0x21f   : > { %v1588_v42 = vrot.slane %v1583_v3, %v1587_v38 }
 0x220   : > { %1401 = vmatmul.mubr.f32.gmra.mrb[2].mxu1 %v4070_v2 }
 0x221   : > { %1521 = vmatpush1.bf16.msra.mxu1 %v3065_v22  ;;  %v4080_v28 = vpop.f32.mrb[4].mxu0 }
 0x222   : > { %v4082_v6 = vpop.f32.mrb[5].mxu0  ;;  %1522 = vmatprep.subr.bf16.mxu1 %v3070_v23 }
 0x223   : > { %v4087_v11 = vpop.f32.mrb[6].mxu0  ;;  %2569 = vmatprep.mubr.msk.f32.mxu1 %vm1317_vm5, %v4082_v6 }
 0x224   : > { %v4091_v13 = vpop.f32.mrb[7].mxu0  ;;  %1407 = vmatmul.mubr.f32.gmra.mrb[4].mxu1 %v4080_v28 }
 0x225   : > { %1523 = vmatpush1.bf16.msra.mxu1 %v3068_v34  ;;  %2570 = vmatprep.mubr.msk.f32.mxu1 %vm1317_vm5, %v4091_v13 }
 0x226   : > { %1524 = vmatprep.subr.bf16.mxu1 %v3073_v7 }
 0x228   : > { %1413 = vmatmul.mubr.f32.gmra.mrb[6].mxu1 %v4087_v11 }
 0x229   : > { %1525 = vmatpush1.bf16.msra.mxu1 %v3071_v14  ;;  %2590 = vmatprep.mubr.msk.bf16.mxu1 %vm1504_vm4, %v1249_v15 }
 0x22a   : > { %1526 = vmatprep.subr.bf16.mxu1 %v3076_v16 }
 0x22d   : > { %1527 = vmatpush1.bf16.msra.mxu1 %v3074_v17 }
 0x22e   : > { %1528 = vmatprep.subr.bf16.mxu1 %v3079_v18 }
 0x231   : > { %1529 = vmatpush1.bf16.msra.mxu1 %v3077_v20 }
 0x232   : > { %1530 = vmatprep.subr.bf16.mxu1 %v3082_v21 }
 0x235   : > { %1531 = vmatpush1.bf16.msra.mxu1 %v3080_v24 }
 0x236   : > { %1532 = vmatprep.subr.bf16.mxu1 %v3085_v26 }
 0x239   : > { %1533 = vmatpush1.bf16.msra.mxu1 %v3083_v30 }
 0x23a   : > { %2589 = vmatprep.subr.msk.bf16.mxu1 %vm1511_vm6, %v2588_v31 }
 0x23d   : > { %1535 = vmatpush1.bf16.msra.mxu1 %v1513_v25 }
 0x23e   : > { %2755 = vmatprep.subr.bf16.mxu1 %v2754_v29  ;;  %v1591_v29 = vsub.s32 1, %v1586_v12 }
 0x240   : > { %1551 = vmatmul.mubr.bf16.vlgmr.msra.gmra.mrb[8].mxu1 %v1248_v48  ;;  %v1592_v48 = vrot.slane %v1583_v3, %v1591_v29  ;;  %v2039_v29 = vld [vmem:[#allocation10 + $0x18] sm:$0xff] }
 0x241   : > { %2757 = vmatpush1.bf16.msra.mxu1 %v2756_v50  ;;  %2591 = vmatprep.mubr.msk.bf16.mxu1 %vm1504_vm4, %v1251_v52 }
 0x242   : > { %2759 = vmatprep.subr.bf16.mxu1 %v2758_v53 }
 0x245   : > { %2761 = vmatpush1.bf16.msra.mxu1 %v2760_v58 }
 0x246   : > { %2763 = vmatprep.subr.bf16.mxu1 %v2762_v59 }
 0x248   : > { %1561 = vmatmul.mubr.bf16.gmra.mrb[12].mxu1 %v1250_v60 }
 0x249   : > { %1677 = vmatprep.mubr.f32.mxu1 %v3462_v61 }
 0x250   : > { %2592 = vmatmul.mubr.msk.f32.vlgmr.msra.gmra.mrb[16].mxu1 %vm1600_vm7, %v549_v39 }
 0x251   : > { %2765 = vmatpush3.bf16.msra.mxu1 %v2762_v59  ;;  %1683 = vmatprep.mubr.f32.mxu1 %v3462_v61 }
 0x252   : > { %2767 = vmatprep.subr.bf16.mxu1 %v2766_v62 }
 0x254   : > { %2593 = vmatmul.mubr.msk.f32.gmra.mrb[18].mxu1 %vm1600_vm7, %v550_v63 }
 0x255   : > { %1689 = vmatprep.mubr.f32.mxu1 %v3462_v61  ;;  %2769 = vmatpush3.bf16.msra.mxu1 %v2766_v62 }
 0x258   : > { %2594 = vmatmul.mubr.msk.f32.gmra.mrb[20].mxu1 %vm1600_vm7, %v551_v0 }
 0x259   : > { %1695 = vmatprep.mubr.f32.mxu1 %v3462_v61 }
 0x25c   : > { %2595 = vmatmul.mubr.msk.f32.gmra.mrb[22].mxu1 %vm1600_vm7, %v552_v1 }
 0x25d   : > { %2670 = vmatprep.mubr.msk.f32.mxu1 %vm1600_vm7, %v549_v39 }
 0x260   : > { %2671 = vmatmul.mubr.msk.f32.vlgmr.msra.gmra.mrb[24].mxu1 %vm1600_vm7, %v550_v63 }
 0x261   : > { %2673 = vmatprep.mubr.msk.f32.mxu1 %vm1600_vm7, %v551_v0 }
 0x264   : > { %2674 = vmatmul.mubr.msk.f32.gmra.mrb[26].mxu1 %vm1600_vm7, %v552_v1 }
 0x2ef   : > { %v1396_v22 = vpop.f32.mrb[0].mxu1 }
 0x2f0   : > { %v1398_v23 = vpop.f32.mrb[1].mxu1 }
 0x2f3   : > { %v1402_v34 = vpop.f32.mrb[2].mxu1 }
 0x2f4   : > { %v1404_v7 = vpop.f32.mrb[3].mxu1 }
 0x2f7   : > { %v1408_v14 = vpop.f32.mrb[4].mxu1 }
 0x2f8   : > { %v1410_v15 = vpop.f32.mrb[5].mxu1 }
 0x2fb   : > { %v1414_v16 = vpop.f32.mrb[6].mxu1 }
 0x2fc   : > { %v1416_v17 = vpop.f32.mrb[7].mxu1 }
 0x313   : > { %v1552_v18 = vpop.f32.mrb[8].mxu1 }
 0x314   : > { %v4143_v20 = vadd.f32 %v1552_v18, %v1396_v22  ;;  %v1554_v21 = vpop.f32.mrb[9].mxu1 }
 0x315   : > { %v4145_v24 = vadd.f32 %v1554_v21, %v1398_v23  ;;  %v1556_v26 = vpop.f32.mrb[10].mxu1  ;;  %v2022_v21 = vld [vmem:[#allocation11 + $0x18] sm:$0xff] }
 0x316   : > { %v4147_v27 = vadd.f32 %v1556_v26, %v1402_v34  ;;  %v1558_v30 = vpop.f32.mrb[11].mxu1  ;;  %v2036_v26 = vld [vmem:[#allocation10] sm:$0xff] }
 0x317   : > { %v4149_v31 = vadd.f32 %v1558_v30, %v1404_v7  ;;  %v2037_v30 = vld [vmem:[#allocation10 + $0x8] sm:$0xff] }
 0x31b   : > { %v1562_v32 = vpop.f32.mrb[12].mxu1 }
 0x31c   : > { %v4151_v33 = vadd.f32 %v1562_v32, %v1408_v14  ;;  %v1564_v35 = vpop.f32.mrb[13].mxu1 }
 0x31d   : > { %v4153_v44 = vadd.f32 %v1564_v35, %v1410_v15  ;;  %v1566_v25 = vpop.f32.mrb[14].mxu1  ;;  %v2770_v35 = vpack.c.bf16 %v2037_v30, %v2036_v26 }
 0x31e   : > { %v4155_v45 = vadd.f32 %v1566_v25, %v1414_v16  ;;  %v1568_v49 = vpop.f32.mrb[15].mxu1  ;;  %v2038_v25 = vld [vmem:[#allocation10 + $0x10] sm:$0xff] }
 0x31f   : > { %v4157_v51 = vadd.f32 %v1568_v49, %v1416_v17  ;;  %v3464_v17 = vmov 0.0|0.0   ;;  %v2023_v49 = vld [vmem:[#allocation11 + $0x20] sm:$0xff]  ;;  %2771 = vmatprep.subr.bf16.mxu1 %v2770_v35 }
 0x320   : > { %2794 = vmatprep.subr.bf16.mxu0 %v3464_v17  ;;  %2773 = vmatpush3.bf16.msra.mxu1 %v2770_v35 }
 0x323   : > { %v1679_v50 = vpop.f32.mrb[16].mxu1 }
 0x324   : > { %v1680_v52 = vadd.f32 %v1679_v50, %v1588_v42  ;;  %v1681_v53 = vpop.f32.mrb[17].mxu1  ;;  %v2774_v50 = vpack.c.bf16 %v2039_v29, %v2038_v25 }
 0x325   : > { %v1682_v54 = vadd.f32 %v1681_v53, %v1592_v48  ;;  %v2041_v53 = vld [vmem:[#allocation10 + $0x28] sm:$0xff] }
 0x326   : > { %v4160_v55 = vadd.f32 %v1680_v52, %v4066_v5  ;;  %v1595_v5 = vsub.s32 2, %v1586_v12  ;;  %v2040_v52 = vld [vmem:[#allocation10 + $0x20] sm:$0xff]  ;;  %2775 = vmatprep.subr.bf16.mxu1 %v2774_v50 }
 0x327   : > { %v4163_v56 = vadd.f32 %v1682_v54, %v4068_v40  ;;  %v1685_v57 = vpop.f32.mrb[18].mxu1  ;;  %2777 = vmatpush3.bf16.msra.mxu1 %v2774_v50 }
 0x328   : > { %v1686_v58 = vadd.f32 %v1685_v57, %v1588_v42  ;;  %v1687_v59 = vpop.f32.mrb[19].mxu1  ;;  %v2025_v57 = vld [vmem:[#allocation11 + $0x30] sm:$0xff] }
 0x329   : > { %v1688_v60 = vadd.f32 %v1687_v59, %v1592_v48  ;;  %v2026_v59 = vld [vmem:[#allocation11 + $0x38] sm:$0xff] }
 0x32a   : > { %v4166_v36 = vadd.f32 %v1686_v58, %v4070_v2  ;;  %v2778_v58 = vpack.c.bf16 %v2041_v53, %v2040_v52 }
 0x32b   : > { %v4169_v37 = vadd.f32 %v1688_v60, %v4074_v19  ;;  %v1691_v39 = vpop.f32.mrb[20].mxu1  ;;  %v1596_v19 = vrot.slane %v1583_v3, %v1595_v5  ;;  %v2021_v3 = vld [vmem:[#allocation11 + $0x10] sm:$0xff] }
 0x32c   : > { %v1692_v62 = vadd.f32 %v1691_v39, %v1588_v42  ;;  %v1693_v63 = vpop.f32.mrb[21].mxu1  ;;  %v4199_v32 = vpack.c.bf16 %v2022_v21, %v2021_v3  ;;  %v2043_v39 = vld [vmem:[#allocation10 + $0x38] sm:$0xff]  ;;  %2779 = vmatprep.subr.bf16.mxu1 %v2778_v58 }
 0x32d   : > { %v4171_v0 = vadd.f32 %v1693_v63, %v1592_v48  ;;  %v2027_v63 = vld [vmem:[#allocation11 + $0x40] sm:$0xff]  ;;  %2781 = vmatpush3.bf16.msra.mxu1 %v2778_v58 }
 0x32e   : > { %v4174_v1 = vadd.f32 %v1692_v62, %v4080_v28  ;;  %v4207_v62 = vpack.c.bf16 %v2026_v59, %v2025_v57 }
 0x32f   : > { %v4178_v40 = vadd.f32 %v4171_v0, %v4082_v6  ;;  %v1697_v10 = vpop.f32.mrb[22].mxu1 }
 0x330   : > { %v1698_v38 = vadd.f32 %v1697_v10, %v1588_v42  ;;  %v1699_v2 = vpop.f32.mrb[23].mxu1  ;;  %v2028_v10 = vld [vmem:[#allocation11 + $0x48] sm:$0xff] }
 0x331   : > { %v4180_v22 = vadd.f32 %v1699_v2, %v1592_v48  ;;  %v2024_v48 = vld [vmem:[#allocation11 + $0x28] sm:$0xff] }
 0x332   : > { %v4183_v23 = vadd.f32 %v1698_v38, %v4087_v11  ;;  %v2019_v11 = vld [vmem:[#allocation11] sm:$0xff]  ;;  %v2045_v2 = vld [vmem:[#allocation10 + $0x48] sm:$0xff] }
 0x333   : > { %v4187_v34 = vadd.f32 %v4180_v22, %v4091_v13  ;;  %v2672_v12 = vpop.f32.mrb[24].mxu1  ;;  %v2020_v13 = vld [vmem:[#allocation11 + $0x8] sm:$0xff]  ;;  %v2044_v38 = vld [vmem:[#allocation10 + $0x40] sm:$0xff] }
 0x334   : > { %v1768_v28 = vpop.f32.mrb[25].mxu1  ;;  %v1774_v42 = vadd.f32 %v2672_v12, %v1596_v19  ;;  %v4196_v18 = vpack.c.bf16 %v2020_v13, %v2019_v11  ;;  %v2786_v12 = vpack.c.bf16 %v2045_v2, %v2044_v38  ;;  %v2034_v11 = vld [vmem:[#allocation11 + $0x78] sm:$0xff] }
 0x335   : > { %v1769_v7 = vadd.f32 %v1768_v28, %v1596_v19  ;;  %v2029_v28 = vld [vmem:[#allocation11 + $0x50] sm:$0xff] }
 0x336   : > { %2796 = vmatpush1.bf16.msra.mxu0 %v4196_v18 }
 0x337   : > { %v2675_v14 = vpop.f32.mrb[26].mxu1  ;;  %1893 = vrot.lane.b32.xlu0 %v1769_v7, %s3463_s21  ;;  %2797 = vmatprep.subr.bf16.mxu0 %v3464_v17  ;;  %v2030_v7 = vld [vmem:[#allocation11 + $0x58] sm:$0xff] }
 0x338   : > { %v1778_v6 = vpop.f32.mrb[27].mxu1  ;;  %v1784_v16 = vadd.f32 %v2675_v14, %v1596_v19  ;;  %v4215_v14 = vpack.c.bf16 %v2030_v7, %v2029_v28 }
 0x339   : > { %v1779_v15 = vadd.f32 %v1778_v6, %v1596_v19  ;;  %v4211_v19 = vpack.c.bf16 %v2028_v10, %v2027_v63  ;;  %v2031_v6 = vld [vmem:[#allocation11 + $0x60] sm:$0xff] }
 0x33a   : > { %2799 = vmatpush1.bf16.msra.mxu0 %v4199_v32 }
 0x33b   : > { %1901 = vrot.lane.b32.xlu1 %v1779_v15, %s3463_s21  ;;  %1897 = vrot.lane.b32.xlu0 %v1774_v42, %s3463_s21  ;;  %v2032_v42 = vld [vmem:[#allocation11 + $0x68] sm:$0xff] }
 0x33c   : > { %2800 = vmatprep.subr.bf16.mxu0 %v3464_v17  ;;  %v4219_v15 = vpack.c.bf16 %v2032_v42, %v2031_v6  ;;  %v2600_v42 = vmul.f32 -1.442695, %v4160_v55 }
 0x33f   : > { %1905 = vrot.lane.b32.xlu1 %v1784_v16, %s3463_s21  ;;  %1891 = vrot.lane.b32.xlu0 %v1682_v54, %s3463_s21  ;;  %v4203_v54 = vpack.c.bf16 %v2024_v48, %v2023_v49  ;;  %v2033_v16 = vld [vmem:[#allocation11 + $0x70] sm:$0xff] }
 0x340   : > { %v4223_v13 = vpack.c.bf16 %v2034_v11, %v2033_v16  ;;  %v2046_v16 = vld [vmem:[#allocation10 + $0x50] sm:$0xff]  ;;  %v4253_v11 = vld [vmem:[#allocation11 + $0x80] sm:$0xf] }
 0x341   : > { %2802 = vmatpush1.bf16.msra.mxu0 %v4203_v54 }
 0x342   : > { %2803 = vmatprep.subr.bf16.mxu0 %v3464_v17 }
 0x343   : > { %1895 = vrot.lane.b32.xlu1 %v1688_v60, %s3463_s21  ;;  %v2042_v60 = vld [vmem:[#allocation10 + $0x30] sm:$0xff] }
 0x344   : > { %v2782_v5 = vpack.c.bf16 %v2043_v39, %v2042_v60 }
 0x345   : > { %2805 = vmatpush1.bf16.msra.mxu0 %v4207_v62 }
 0x346   : > { %2783 = vmatprep.subr.bf16.mxu1 %v2782_v5  ;;  %2806 = vmatprep.subr.bf16.mxu0 %v3464_v17 }
 0x347   : > { %2785 = vmatpush3.bf16.msra.mxu1 %v2782_v5 }
 0x348   : > { %2787 = vmatprep.subr.bf16.mxu1 %v2786_v12 }
 0x349   : > { %2808 = vmatpush1.bf16.msra.mxu0 %v4211_v19 }
 0x34a   : > { %2809 = vmatprep.subr.bf16.mxu0 %v3464_v17 }
 0x34b   : > { %2789 = vmatpush3.bf16.msra.mxu1 %v2786_v12 }
 0x34d   : > { %2811 = vmatpush1.bf16.msra.mxu0 %v4215_v14 }
 0x34e   : > { %2812 = vmatprep.subr.bf16.mxu0 %v3464_v17 }
 0x351   : > { %2814 = vmatpush1.bf16.msra.mxu0 %v4219_v15 }
 0x352   : > { %2815 = vmatprep.subr.bf16.mxu0 %v3464_v17 }
 0x355   : > { %2817 = vmatpush1.bf16.msra.mxu0 %v4223_v13 }
 0x356   : > { %2193 = vmatprep.subr.mxu0 %v3462_v61 }
 0x359   : > { %2620 = vmatpush1.msk.msra.mxu0 %vm781_vm3, %v4253_v11 }
 0x35a   : > { %2226 = vmatmul.mubr.f32.vlgmr.msra.gmra.mrb[8].mxu0 %v4100_v41 }
 0x35b   : > { %2622 = vmatprep.mubr.msk.f32.mxu0 %vm1504_vm4, %v4085_v9 }
 0x35e   : > { %2231 = vmatmul.mubr.f32.gmra.mrb[10].mxu0 %v4103_v43 }
 0x35f   : > { %2623 = vmatprep.mubr.msk.f32.mxu0 %vm1504_vm4, %v4106_v46  ;;  %v2606_v46 = vmul.f32 -1.442695, %v4183_v23 }
 0x362   : > { %2236 = vmatmul.mubr.f32.gmra.mrb[12].mxu0 %v4117_v4 }
 0x3a9   : > { %v1894_v3 = vpop.permute.xlu0 %1893 }
 0x3aa   : > { %v1927_v21 = vadd.f32 %v1894_v3, %v4143_v20  ;;  %v1928_v26 = vadd.f32 %v1894_v3, %v4145_v24 }
 0x3ac   : > { %v2608_v30 = vmul.f32 -1.442695, %v1927_v21  ;;  %v2609_v35 = vmul.f32 -1.442695, %v1928_v26 }
 0x3ad   : > { %v4230_v25 = vpop.permute.xlu1 %1901  ;;  %v1898_v29 = vpop.permute.xlu0 %1897 }
 0x3ae   : > { %3088 = vpow2.f32 %v2608_v30  ;;  %v1929_v49 = vadd.f32 %v1898_v29, %v4147_v27  ;;  %v1930_v48 = vadd.f32 %v1898_v29, %v4149_v31  ;;  %v1931_v50 = vadd.f32 %v4230_v25, %v4151_v33 }
 0x3af   : > { %3090 = vpow2.f32 %v2609_v35  ;;  %v1932_v53 = vadd.f32 %v4230_v25, %v4153_v44 }
 0x3b0   : > { %v2610_v52 = vmul.f32 -1.442695, %v1929_v49  ;;  %v2611_v57 = vmul.f32 -1.442695, %v1930_v48  ;;  %v2612_v31 = vmul.f32 -1.442695, %v1931_v50 }
 0x3b1   : > { %v4238_v24 = vpop.permute.xlu1 %1905  ;;  %v1892_v58 = vpop.permute.xlu0 %1891  ;;  %v2613_v63 = vmul.f32 -1.442695, %v1932_v53  ;;  %v2604_v49 = vmul.f32 -1.442695, %v4174_v1  ;;  %v2605_v50 = vmul.f32 -1.442695, %v4178_v40 }
 0x3b2   : > { %v1933_v59 = vadd.f32 %v4238_v24, %v4155_v45  ;;  %v1907_v60 = vsel %vm1317_vm5, %v1892_v58, %v1894_v3  ;;  %3092 = vpow2.f32 %v2610_v52  ;;  %v1934_v5 = vadd.f32 %v4238_v24, %v4157_v51  ;;  %v2047_v51 = vld [vmem:[#allocation10 + $0x58] sm:$0xff] }
 0x3b3   : > { %v4244_v39 = vadd.f32 %v1907_v60, %v4143_v20  ;;  %3094 = vpow2.f32 %v2611_v57  ;;  %v2601_v3 = vmul.f32 -1.442695, %v4163_v56  ;;  %v2602_v56 = vmul.f32 -1.442695, %v4166_v36 }
 0x3b4   : > { %v2614_v10 = vmul.f32 -1.442695, %v1933_v59  ;;  %3096 = vpow2.f32 %v2612_v31  ;;  %v2615_v20 = vmul.f32 -1.442695, %v1934_v5  ;;  %v2607_v58 = vmul.f32 -1.442695, %v4187_v34 }
 0x3b5   : > { %v1896_v44 = vpop.permute.xlu1 %1895  ;;  %3098 = vpow2.f32 %v2613_v63 }
 0x3b6   : > { %v1908_v38 = vsel %vm1317_vm5, %v1896_v44, %v1898_v29  ;;  %3100 = vpow2.f32 %v2614_v10  ;;  %v2603_v29 = vmul.f32 -1.442695, %v4169_v37 }
 0x3b7   : > { %v4250_v2 = vadd.f32 %v1908_v38, %v4147_v27  ;;  %v2790_v27 = vpack.c.bf16 %v2047_v51, %v2046_v16 }
 0x3b8   : > { %v3089_v12 = vpop.eup %3088 }
 0x3b9   : > { %v3091_v28 = vpop.eup %3090  ;;  %v1959_v7 = vadd.f32 1.0, %v3089_v12  ;;  %2791 = vmatprep.subr.bf16.mxu1 %v2790_v27 }
 0x3ba   : > { %v1960_v6 = vadd.f32 1.0, %v3091_v28  ;;  %2793 = vmatpush3.bf16.msra.mxu1 %v2790_v27 }
 0x3bb   : > { %3102 = vrcp.f32 %v1959_v7  ;;  %2818 = vmatprep.subr.bf16.mxu1 %v3464_v17 }
 0x3bc   : > { %3104 = vrcp.f32 %v1960_v6  ;;  %v3093_v21 = vpop.eup %3092 }
 0x3bd   : > { %3106 = vpow2.f32 %v2615_v20  ;;  %v3095_v26 = vpop.eup %3094  ;;  %v1961_v30 = vadd.f32 1.0, %v3093_v21 }
 0x3be   : > { %3108 = vpow2.f32 %v2600_v42  ;;  %v1962_v35 = vadd.f32 1.0, %v3095_v26  ;;  %v3097_v41 = vpop.eup %3096 }
 0x3bf   : > { %3110 = vpow2.f32 %v2601_v3  ;;  %v3099_v9 = vpop.eup %3098  ;;  %v1963_v53 = vadd.f32 1.0, %v3097_v41 }
 0x3c0   : > { %3112 = vrcp.f32 %v1961_v30  ;;  %v3101_v48 = vpop.eup %3100  ;;  %v1964_v57 = vadd.f32 1.0, %v3099_v9 }
 0x3c1   : > { %3114 = vrcp.f32 %v1962_v35  ;;  %v1965_v59 = vadd.f32 1.0, %v3101_v48 }
 0x3c2   : > { %3116 = vpow2.f32 %v2602_v56 }
 0x3c3   : > { %3118 = vpow2.f32 %v2603_v29 }
 0x3c4   : > { %3120 = vpow2.f32 %v2604_v49 }
 0x3c5   : > { %v3103_v52 = vpop.eup %3102  ;;  %3122 = vpow2.f32 %v2605_v50 }
 0x3c6   : > { %v3105_v37 = vpop.eup %3104  ;;  %1991 = vrot.lane.b32.xlu0 %v3103_v52, %s3465_s3  ;;  %3124 = vrcp.f32 %v1963_v53 }
 0x3c7   : > { %v3107_v43 = vpop.eup %3106  ;;  %1993 = vrot.lane.b32.xlu1 %v3105_v37, %s3465_s3  ;;  %3126 = vrcp.f32 %v1964_v57 }
 0x3c8   : > { %v3109_v40 = vpop.eup %3108  ;;  %v1966_v4 = vadd.f32 1.0, %v3107_v43  ;;  %3128 = vpow2.f32 %v2606_v46 }
 0x3c9   : > { %v3111_v60 = vpop.eup %3110  ;;  %3130 = vpow2.f32 %v2607_v58  ;;  %v1823_v5 = vadd.f32 1.0, %v3109_v40 }
 0x3ca   : > { %v3113_v31 = vpop.eup %3112  ;;  %3132 = vrcp.f32 %v1965_v59  ;;  %v1824_v10 = vadd.f32 1.0, %v3111_v60 }
 0x3cb   : > { %v3115_v63 = vpop.eup %3114  ;;  %1995 = vrot.lane.b32.xlu0 %v3113_v31, %s3465_s3  ;;  %3134 = vrcp.f32 %v1966_v4 }
 0x3cc   : > { %1997 = vrot.lane.b32.xlu1 %v3115_v63, %s3465_s3  ;;  %v3117_v44 = vpop.eup %3116  ;;  %3136 = vrcp.f32 %v1823_v5 }
 0x3cd   : > { %v3119_v34 = vpop.eup %3118  ;;  %v1825_v12 = vadd.f32 1.0, %v3117_v44  ;;  %3138 = vrcp.f32 %v1824_v10 }
 0x3ce   : > { %v3121_v38 = vpop.eup %3120  ;;  %v1826_v7 = vadd.f32 1.0, %v3119_v34 }
 0x3cf   : > { %1899 = vrot.lane.b32.xlu0 %v4171_v0, %s3463_s21  ;;  %v3123_v28 = vpop.eup %3122  ;;  %3140 = vrcp.f32 %v1825_v12  ;;  %v1827_v16 = vadd.f32 1.0, %v3121_v38 }
 0x3d0   : > { %1903 = vrot.lane.b32.xlu1 %v4180_v22, %s3463_s21  ;;  %v3125_v20 = vpop.eup %3124  ;;  %3142 = vrcp.f32 %v1826_v7  ;;  %v1828_v0 = vadd.f32 1.0, %v3123_v28  ;;  %s3342_s21 = sshll.u32 %s3466_s11, 4  ;;  %s3343_s21 = int_to_ptr.vmem [resolvable:$false] %s3342_s21 }
 0x3d1   : > { %v3127_v6 = vpop.eup %3126  ;;  %3144 = vrcp.f32 %v1827_v16  ;;  %p3345_p12 = scmp.lt.s32.totalorder %s4351_s26, %s3343_s21 }
 0x3d2   : > { %v3129_v42 = vpop.eup %3128  ;;  %3146 = vrcp.f32 %v1828_v0 }
 0x3d3   : > { %1999 = vrot.lane.b32.xlu0 %v3125_v20, %s3465_s3  ;;  %v3131_v51 = vpop.eup %3130  ;;  %v1829_v22 = vadd.f32 1.0, %v3129_v42 }
 0x3d4   : > { %2001 = vrot.lane.b32.xlu1 %v3127_v6, %s3465_s3  ;;  %v3133_v3 = vpop.eup %3132  ;;  %v1830_v21 = vadd.f32 1.0, %v3131_v51 }
 0x3d5   : > { %v3135_v27 = vpop.eup %3134  ;;  %3148 = vrcp.f32 %v1829_v22 }
 0x3d6   : > { %v3137_v26 = vpop.eup %3136  ;;  %3150 = vrcp.f32 %v1830_v21 }
 0x3d7   : > { %2003 = vrot.lane.b32.xlu0 %v3133_v3, %s3465_s3  ;;  %v3139_v30 = vpop.eup %3138  ;;  %3152 = vtanh.f32 %v4244_v39 }
 0x3d8   : > { %2005 = vrot.lane.b32.xlu1 %v3135_v27, %s3465_s3  ;;  %3154 = vtanh.f32 %v4250_v2 }
 0x3d9   : > { %v3141_v56 = vpop.eup %3140  ;;  %3156 = vtanh.f32 %v4160_v55 }
 0x3da   : > { %v3143_v35 = vpop.eup %3142 }
 0x3db   : > { %1855 = vrot.lane.b32.xlu0 %v3137_v26, %s3465_s3  ;;  %v3145_v29 = vpop.eup %3144 }
 0x3dc   : > { %1857 = vrot.lane.b32.xlu1 %v3139_v30, %s3465_s3  ;;  %v3147_v41 = vpop.eup %3146 }
 0x3df   : > { %1859 = vrot.lane.b32.xlu0 %v3141_v56, %s3465_s3  ;;  %v3149_v9 = vpop.eup %3148 }
 0x3e0   : > { %1861 = vrot.lane.b32.xlu1 %v3143_v35, %s3465_s3  ;;  %v3151_v49 = vpop.eup %3150 }
 0x3e1   : > { %v3153_v52 = vpop.eup %3152 }
 0x3e2   : > { %v3155_v46 = vpop.eup %3154 }
 0x3e3   : > { %1863 = vrot.lane.b32.xlu0 %v3145_v29, %s3465_s3  ;;  %v3157_v55 = vpop.eup %3156 }
 0x3e4   : > { %1865 = vrot.lane.b32.xlu1 %v3147_v41, %s3465_s3 }
 0x3e7   : > { %1867 = vrot.lane.b32.xlu0 %v3149_v9, %s3465_s3 }
 0x3e8   : > { %1869 = vrot.lane.b32.xlu1 %v3151_v49, %s3465_s3  ;;  %s3344_s3 = scalar_lea.vmem %s3343_s21, 1024 }
 0x3e9   : > { %p3346_p13 = scmp.lt.s32.totalorder %s3344_s3, %s3338_s24 }
 0x3eb   : > { %p3347_p8 = por %p3346_p13, %p3345_p12 }
 0x3ed   : > { %p3348_p6 = pnand %p3347_p8, %p3341_p11 }
 0x438   : > { %v1992_v48 = vpop.permute.xlu0 %1991 }
 0x439   : > { %v1994_v50 = vpop.permute.xlu1 %1993 }
 0x43a   : > { %v2007_v53 = vsel %vm1600_vm7, %v1992_v48, %v1994_v50 }
 0x43b   : > { %v2015_v37 = vmul.f32 %v3153_v52, %v2007_v53 }
 0x43d   : > { %2700 = vmatprep.mubr.msk.f32.mxu1 %vm2048_vm8, %v2015_v37  ;;  %v1996_v57 = vpop.permute.xlu0 %1995 }
 0x43e   : > { %v1998_v43 = vpop.permute.xlu1 %1997 }
 0x43f   : > { %v2008_v58 = vsel %vm1600_vm7, %v1996_v57, %v1998_v43 }
 0x440   : > { %v2016_v40 = vmul.f32 %v3155_v46, %v2008_v58 }
 0x441   : > { %v1900_v59 = vpop.permute.xlu0 %1899 }
 0x442   : > { %v1904_v60 = vpop.permute.xlu1 %1903  ;;  %v1909_v39 = vsel %vm1317_vm5, %v1900_v59, %v4230_v25  ;;  %2701 = vmatmul.mubr.msk.f32.vlgmr.msra.gmra.mrb[28].mxu1 %vm2048_vm8, %v2016_v40 }
 0x443   : > { %v1910_v2 = vsel %vm1317_vm5, %v1904_v60, %v4238_v24  ;;  %v1917_v4 = vadd.f32 %v1909_v39, %v4151_v33  ;;  %2827 = vmatpush1.bf16.msra.mxu1 %v4196_v18 }
 0x444   : > { %v1918_v31 = vadd.f32 %v1910_v2, %v4155_v45  ;;  %2819 = vmatprep.subr.bf16.mxu1 %v3464_v17 }
 0x445   : > { %3158 = vtanh.f32 %v1917_v4  ;;  %v2000_v63 = vpop.permute.xlu0 %1999 }
 0x446   : > { %3160 = vtanh.f32 %v1918_v31  ;;  %v2002_v25 = vpop.permute.xlu1 %2001 }
 0x447   : > { %2828 = vmatpush1.bf16.msra.mxu1 %v4199_v32  ;;  %3162 = vtanh.f32 %v4166_v36  ;;  %v2009_v32 = vsel %vm1600_vm7, %v2000_v63, %v2002_v25 }
 0x448   : > { %2820 = vmatprep.subr.bf16.mxu1 %v3464_v17  ;;  %3164 = vtanh.f32 %v4174_v1 }
 0x449   : > { %v2004_v33 = vpop.permute.xlu0 %2003  ;;  %3166 = vtanh.f32 %v4183_v23 }
 0x44a   : > { %v2006_v24 = vpop.permute.xlu1 %2005 }
 0x44b   : > { %2829 = vmatpush1.bf16.msra.mxu1 %v4203_v54  ;;  %v2010_v54 = vsel %vm1600_vm7, %v2004_v33, %v2006_v24 }
 0x44c   : > { %2821 = vmatprep.subr.bf16.mxu1 %v3464_v17 }
 0x44d   : > { %v1856_v45 = vpop.permute.xlu0 %1855 }
 0x44e   : > { %v1858_v18 = vpop.permute.xlu1 %1857 }
 0x44f   : > { %v3159_v5 = vpop.eup %3158  ;;  %v1871_v44 = vsel %vm1600_vm7, %v1856_v45, %v1858_v18  ;;  %2830 = vmatpush1.bf16.msra.mxu1 %v4207_v62 }
 0x450   : > { %v3161_v36 = vpop.eup %3160  ;;  %v2017_v10 = vmul.f32 %v3159_v5, %v2009_v32  ;;  %v1879_v34 = vmul.f32 %v3157_v55, %v1871_v44  ;;  %2822 = vmatprep.subr.bf16.mxu1 %v3464_v17 }
 0x451   : > { %v2018_v1 = vmul.f32 %v3161_v36, %v2010_v54  ;;  %v1860_v38 = vpop.permute.xlu0 %1859  ;;  %v3163_v62 = vpop.eup %3162 }
 0x452   : > { %2246 = vst.msk [vmem:[%s4322_s22] sm:$0xff] %vm2048_vm8, %v1879_v34  ;;  %v1862_v12 = vpop.permute.xlu1 %1861  ;;  %2703 = vmatprep.mubr.msk.f32.mxu1 %vm2048_vm8, %v2017_v10  ;;  %v3165_v6 = vpop.eup %3164 }
 0x453   : > { %v1872_v28 = vsel %vm1600_vm7, %v1860_v38, %v1862_v12  ;;  %2831 = vmatpush1.bf16.msra.mxu1 %v4211_v19  ;;  %v3167_v0 = vpop.eup %3166 }
 0x454   : > { %v1880_v7 = vmul.f32 %v3163_v62, %v1872_v28  ;;  %2704 = vmatmul.mubr.msk.f32.gmra.mrb[30].mxu1 %vm2048_vm8, %v2018_v1  ;;  %2823 = vmatprep.subr.bf16.mxu1 %v3464_v17 }
 0x455   : > { %v1864_v23 = vpop.permute.xlu0 %1863  ;;  %2624 = vmatprep.mubr.msk.f32.mxu1 %vm1504_vm4, %v4109_v47 }
 0x456   : > { %2247 = vst.msk [vmem:[%s4322_s22 + $0x8] sm:$0xff] %vm2048_vm8, %v1880_v7  ;;  %v1866_v20 = vpop.permute.xlu1 %1865 }
 0x457   : > { %v1873_v42 = vsel %vm1600_vm7, %v1864_v23, %v1866_v20  ;;  %2832 = vmatpush1.bf16.msra.mxu1 %v4215_v14  ;;  %v2227_v14 = vpop.f32.mrb[8].mxu0 }
 0x458   : > { %v1881_v16 = vmul.f32 %v3165_v6, %v1873_v42  ;;  %2824 = vmatprep.subr.bf16.mxu1 %v3464_v17 }
 0x459   : > { %v1868_v19 = vpop.permute.xlu0 %1867 }
 0x45a   : > { %2248 = vst.msk [vmem:[%s4322_s22 + $0x10] sm:$0xff] %vm2048_vm8, %v1881_v16  ;;  %v1870_v51 = vpop.permute.xlu1 %1869 }
 0x45b   : > { %v1874_v47 = vsel %vm1600_vm7, %v1868_v19, %v1870_v51  ;;  %2833 = vmatpush1.bf16.msra.mxu1 %v4219_v15  ;;  %v2229_v15 = vpop.f32.mrb[9].mxu0 }
 0x45c   : > { %v1882_v3 = vmul.f32 %v3167_v0, %v1874_v47  ;;  %2825 = vmatprep.subr.bf16.mxu1 %v3464_v17  ;;  %v2232_v27 = vpop.f32.mrb[10].mxu0 }
 0x45d   : > { %v2234_v22 = vpop.f32.mrb[11].mxu0 }
 0x45e   : > { %2249 = vst.msk [vmem:[%s4322_s22 + $0x18] sm:$0xff] %vm2048_vm8, %v1882_v3  ;;  %v2237_v21 = vpop.f32.mrb[12].mxu0 }
 0x45f   : > { %2834 = vmatpush1.bf16.msra.mxu1 %v4223_v13  ;;  %v2239_v26 = vpop.f32.mrb[13].mxu0 }
 0x460   : > { %2826 = vmatprep.subr.mxu1 %v3462_v61 }
 0x463   : > { %2835 = vmatpush1.msk.msra.mxu1 %vm781_vm3, %v4253_v11 }
 0x464   : > { %2241 = vmatmul.mubr.f32.vlgmr.msra.gmra.mrb[32].mxu1 %v4120_v8 }
 0x465   : > { %3351 = shalt.err (!%p3348_p6)
}
 0x466   : > { %s3352_s22 = scalar_lea.hbm %s4359_s27, 512  ;;  %s3356_s11 = scalar_lea.hbm %s4492_s29, 1024 }
 0x467   : > { %p3353_p9 = scmp.ne.s32.totalorder %s4359_s27, %s3352_s22  ;;  %p3357_p0 = scmp.lt.u32.totalorder %s4359_s27, %s4492_s29 }
 0x468   : > { %p3358_p5 = scmp.lt.u32.totalorder %s3356_s11, %s3352_s22  ;;  %p3360_p7 = scmp.lt.u32.totalorder %s3352_s22, %s4359_s27 }
 0x469   : > { %p3354_p4 = pnand %p3353_p9, %p4493_p10 }
 0x46a   : > { %p3359_p2 = por %p3358_p5, %p3357_p0 }
 0x46b   : > { %p3355_p3 = pneg %p3354_p4 }
 0x46c   : > { %p3361_p1 = por %p3360_p7, %p3359_p2 }
 0x46e   : > { %p3362_p11 = pnand %p3361_p1, %p3355_p3 }
 0x470   : > { %3365 = shalt.err (!%p3362_p11)
}
 0x471   : > { %s4468_s24 = smov 128   ;;  %s4469_s3 = smov 8  }
 0x472   : > { %2874 = dma.vmem_to_hbm [thread:$0]  (%p4493_p10), %s4351_s26, 512, %s4359_s27, %s2255_s30, %s4468_s24, %s4468_s24, %s4469_s3  }
 0x473   : > { %s523_s14 = scalar_lea.vmem [#allocation14], %s2485_s25  ;;  %s4494_s25 = sshll.u32 %s3551_s23, 9 }
 0x474   : > { %s2289_s22 = sshll.u32 %s523_s14, 4  ;;  %s4495_s30 = sld [smem:[#allocation25_spill]]  ;;  %s4393_s22 = int_to_ptr.vmem [resolvable:$true] %s2289_s22 }
 0x475   : > { %s2260_s13 = scalar_lea.sflag [#allocation15], %s3769_s28  ;;  %s3366_s11 = scalar_lea.vmem %s4393_s22, 512 }
 0x476   : > { %p3367_p12 = scmp.ne.s32.totalorder %s4393_s22, %s3366_s11  ;;  %s3469_s21 = smov [#allocation14]  }
 0x477   : > { %s3370_s24 = sshll.u32 %s3469_s21, 4  ;;  %s3371_s24 = int_to_ptr.vmem [resolvable:$false] %s3370_s24 }
 0x478   : > { %p3368_p13 = pnand %p3367_p12, %p4493_p10  ;;  %s3372_s3 = scalar_lea.vmem %s3371_s24, 1024 }
 0x479   : > { %p3373_p6 = scmp.lt.s32.totalorder %s4393_s22, %s3371_s24  ;;  %p3374_p9 = scmp.lt.s32.totalorder %s3372_s3, %s3366_s11 }
 0x47a   : > { %s4400_s10 = scalar_lea.hbm %s4495_s30, %s4494_s25  ;;  %p3369_p8 = pneg %p3368_p13 }
 0x47b   : > { %p3375_p4 = por %p3374_p9, %p3373_p6 }
 0x47d   : > { %p3376_p3 = pnand %p3375_p4, %p3369_p8 }
 0x515   : > { %v2702_v8 = vpop.f32.mrb[28].mxu1 }
 0x516   : > { %v2233_v61 = vadd.f32 %v2702_v8, %v2232_v27  ;;  %v2127_v17 = vpop.f32.mrb[29].mxu1 }
 0x517   : > { %v2228_v13 = vadd.f32 %v2227_v14, %v2127_v17 }
 0x518   : > { %2251 = vst.msk [vmem:[%s523_s14 + $0x8] sm:$0xff] %vm2048_vm8, %v2233_v61 }
 0x519   : > { %2250 = vst.msk [vmem:[%s523_s14] sm:$0xff] %vm2048_vm8, %v2228_v13 }
 0x527   : > { %v2705_v11 = vpop.f32.mrb[30].mxu1 }
 0x528   : > { %v2137_v30 = vpop.f32.mrb[31].mxu1 }
 0x529   : > { %v2238_v56 = vadd.f32 %v2237_v21, %v2137_v30 }
 0x52b   : > { %2252 = vst.msk [vmem:[%s523_s14 + $0x10] sm:$0xff] %vm2048_vm8, %v2238_v56 }
 0x537   : > { %v2242_v35 = vpop.f32.mrb[32].mxu1 }
 0x538   : > { %v2243_v29 = vadd.f32 %v2705_v11, %v2242_v35  ;;  %v2244_v41 = vpop.f32.mrb[33].mxu1 }
 0x53a   : > { %2253 = vst.msk [vmem:[%s523_s14 + $0x18] sm:$0xff] %vm2048_vm8, %v2243_v29 }
 0x53b   : > { %3379 = shalt.err (!%p3376_p3)
}
 0x53c   : > { %s3380_s23 = scalar_lea.hbm %s4400_s10, 512  ;;  %s3384_s26 = scalar_lea.hbm %s4495_s30, 1024 }
 0x53d   : > { %p3381_p0 = scmp.ne.s32.totalorder %s4400_s10, %s3380_s23  ;;  %p3385_p7 = scmp.lt.u32.totalorder %s4400_s10, %s4495_s30 }
 0x53e   : > { %p3386_p1 = scmp.lt.u32.totalorder %s3384_s26, %s3380_s23  ;;  %p3388_p12 = scmp.lt.u32.totalorder %s3380_s23, %s4400_s10 }
 0x53f   : > { %p3382_p5 = pnand %p3381_p0, %p4493_p10 }
 0x540   : > { %p3387_p11 = por %p3386_p1, %p3385_p7 }
 0x541   : > { %p3383_p2 = pneg %p3382_p5 }
 0x542   : > { %p3389_p13 = por %p3388_p12, %p3387_p11 }
 0x544   : > { %p3390_p8 = pnand %p3389_p13, %p3383_p2 }
 0x546   : > { %3393 = shalt.err (!%p3390_p8)
}
 0x547   : > { %s4496_s3 = smov 8   ;;  %s4497_s11 = smov 128  }
 0x548   : > { %2875 = dma.vmem_to_hbm [thread:$0]  (%p4493_p10), %s4393_s22, 512, %s4400_s10, %s2260_s13, %s4497_s11, %s4497_s11, %s4496_s3  }
 0x549 PF: > { %s2304_s21 = sand.u32 1, %s3436_s17   ;;  %p4498_p6 = scmp.ne.s32.totalorder %s4482_s15, 0 }
 0x54a   : > { %p4499_p9 = scmp.ge.s32.totalorder %s3448_s20, 2  ;;  %s2305_s23 = scalar_lea.sflag [#allocation4], %s2304_s21 }
 0x54c   : > { %p2899_p4 = pnand %p4499_p9, %p4498_p6 }
 0x54e   : > { %3427 = dma.done.wait (!%p2899_p4), %s2305_s23, 512  }
 0x54f   : > { %3429 = vsyncadd (!%p2899_p4), %s2305_s23, 4294966784  ;;  %s2314_s12 = scalar_lea.sflag [#allocation15], %s2304_s21 }
 0x550   : > { %3431 = dma.done.wait (!%p2899_p4), %s2314_s12, 512  }
 0x551   : > { %3433 = vsyncadd (!%p2899_p4), %s2314_s12, 4294966784  ;;  %p31_p10 = scmp.ge.s32.totalorder %s3696_s16, 4   ;;  %s4500_s17 = smov %s3440_s18 }
 0x552   : > { %s4501_s18 = smov %s3444_s19  ;;  %s4502_s19 = smov %s3708_s7 }
 0x553   : > { %s4503_s20 = smov %s3696_s16  ;;  %33 = sbr.rel (!%p31_p10) target bundleno = 15 (0xf), region = 150 }
 0x55a   :  { %2319 = vsyncpa [#allocation3], 1 }
 0x55b   :  { %2321 = vsyncpa [#allocation3 + $0x1], 1 }
 0x55c   :  { %2322 = vsyncpa [#allocation6], 1 }
 0x55d   :  { %2323 = vsyncpa [#allocation9], 1 }
 0x55e   :  { %2324 = vsyncpa [#allocation12], 1 }
 0x55f   :  { %2325 = vsyncpa [#allocation4], 1 }
 0x560   :  { %2327 = vsyncpa [#allocation4 + $0x1], 1 }
 0x561   :  { %2328 = vsyncpa [#allocation15], 1 }
 0x562   :  { %2330 = vsyncpa [#allocation15 + $0x1], 1 }

</bundles_post_ra>
